<compile_context>
chip_gen: v6e
topology: v6e:2x2x1
jax: 0.10.0
libtpu: 0.0.40
codegen_flags: <defaults>
</compile_context>

<pallas_src>
import functools
from math import floor

import jax
import jax.numpy as jnp
from jax.experimental import pallas as pl
from jax.experimental.pallas import tpu as pltpu


def _cparams(semantics):
    return pltpu.CompilerParams(dimension_semantics=semantics,
                                vmem_limit_bytes=48 * 1024 * 1024)


def _round_up(x, m):
    return (x + m - 1) // m * m


# ----------------------------- Pallas kernels -------------------------------


def _tap_conv_kernel(x_ref, s_ref, t_ref, w_ref, b_ref, y_ref, ps_ref, pq_ref, *, relu):
    """(optional BN-fold + ReLU) -> stride-1 k-tap conv -> +bias, plus column stats."""
    k = w_ref.shape[0]
    lout = y_ref.shape[1]
    cout = y_ref.shape[2]
    x = x_ref[0] * s_ref[...] + t_ref[...]          # (Lin, Cin) f32 BN fold
    if relu:
        x = jnp.maximum(x, 0.0)
    xb = x.astype(jnp.bfloat16)                     # bf16 MXU operands
    acc = jnp.zeros((lout, cout), jnp.float32)
    for t in range(k):                              # k-tap conv == k shifted matmuls
        acc = acc + jnp.dot(xb[t:t + lout, :], w_ref[t],
                            preferred_element_type=jnp.float32)
    acc = acc + b_ref[...]
    y_ref[0] = acc
    ps_ref[0] = jnp.sum(acc, axis=0, keepdims=True)        # fused stats epilogue
    pq_ref[0] = jnp.sum(acc * acc, axis=0, keepdims=True)


def tap_conv(x_nlc, scale, shift, w_taps, bias, *, relu):
    """Channels-last stride-1 Conv1d (padding already applied by caller).

    x_nlc: (N, Lin, Cin) f32;  w_taps: (k, Cin, Cout) bf16;  bias: (Cout,) f32.
    Returns (y (N, Lout, Cout) f32, col_sum (Cout,), col_sumsq (Cout,)).
    """
    n, lin, cin = x_nlc.shape
    k, _, cout = w_taps.shape
    lout = lin - k + 1
    y, ps, pq = pl.pallas_call(
        functools.partial(_tap_conv_kernel, relu=relu),
        grid=(n,),
        in_specs=[
            pl.BlockSpec((1, lin, cin), lambda i: (i, 0, 0)),
            pl.BlockSpec((1, cin), lambda i: (0, 0)),
            pl.BlockSpec((1, cin), lambda i: (0, 0)),
            pl.BlockSpec((k, cin, cout), lambda i: (0, 0, 0)),
            pl.BlockSpec((1, cout), lambda i: (0, 0)),
        ],
        out_specs=(
            pl.BlockSpec((1, lout, cout), lambda i: (i, 0, 0)),
            pl.BlockSpec((1, 1, cout), lambda i: (i, 0, 0)),
            pl.BlockSpec((1, 1, cout), lambda i: (i, 0, 0)),
        ),
        out_shape=(
            jax.ShapeDtypeStruct((n, lout, cout), jnp.float32),
            jax.ShapeDtypeStruct((n, 1, cout), jnp.float32),
            jax.ShapeDtypeStruct((n, 1, cout), jnp.float32),
        ),
        compiler_params=_cparams(("parallel",)),
    )(x_nlc, scale.reshape(1, cin), shift.reshape(1, cin), w_taps,
      bias.reshape(1, cout))
    return y, jnp.sum(ps[:, 0, :], axis=0), jnp.sum(pq[:, 0, :], axis=0)


def _bn_relu_mm_kernel(x_ref, s_ref, t_ref, w_ref, y_ref, ps_ref, pq_ref, *,
                       m_valid, blk_m, needs_mask):
    xn = jnp.maximum(x_ref[...] * s_ref[...] + t_ref[...], 0.0)
    if needs_mask:                                   # zero rows added by tile padding
        row = (jax.lax.broadcasted_iota(jnp.int32, xn.shape, 0)
               + pl.program_id(0) * blk_m)
        xn = jnp.where(row < m_valid, xn, 0.0)
    y = jnp.dot(xn.astype(jnp.bfloat16), w_ref[...],
                preferred_element_type=jnp.float32)
    y_ref[...] = y
    ps_ref[0] = jnp.sum(y, axis=0, keepdims=True)          # fused stats epilogue
    pq_ref[0] = jnp.sum(y * y, axis=0, keepdims=True)


def bn_relu_matmul_stats(x, scale, shift, w_bf16, tm=256):
    """relu(x*scale+shift) @ w  (bf16 MXU operands, f32 accumulate) + column sum / sumsq
    of the result.  Rows (M = N*L) are tiled into `tm` blocks on a parallel grid axis."""
    m, kdim = x.shape
    n = w_bf16.shape[1]
    if m <= tm:
        blk_m, grid_m, m_pad, xp = m, 1, m, x
    else:
        m_pad = _round_up(m, tm)
        xp = jnp.pad(x, ((0, m_pad - m), (0, 0))) if m_pad != m else x
        blk_m, grid_m = tm, m_pad // tm
    kernel = functools.partial(_bn_relu_mm_kernel, m_valid=m, blk_m=blk_m,
                               needs_mask=(m_pad != m))
    y, ps, pq = pl.pallas_call(
        kernel,
        grid=(grid_m,),
        in_specs=[
            pl.BlockSpec((blk_m, kdim), lambda i: (i, 0)),
            pl.BlockSpec((1, kdim), lambda i: (0, 0)),
            pl.BlockSpec((1, kdim), lambda i: (0, 0)),
            pl.BlockSpec((kdim, n), lambda i: (0, 0)),
        ],
        out_specs=(
            pl.BlockSpec((blk_m, n), lambda i: (i, 0)),
            pl.BlockSpec((1, 1, n), lambda i: (i, 0, 0)),
            pl.BlockSpec((1, 1, n), lambda i: (i, 0, 0)),
        ),
        out_shape=(
            jax.ShapeDtypeStruct((m_pad, n), jnp.float32),
            jax.ShapeDtypeStruct((grid_m, 1, n), jnp.float32),
            jax.ShapeDtypeStruct((grid_m, 1, n), jnp.float32),
        ),
        compiler_params=_cparams(("parallel",)),
    )(xp, scale.reshape(1, kdim), shift.reshape(1, kdim), w_bf16)
    if m_pad != m:
        y = y[:m]
    return y, jnp.sum(ps[:, 0, :], axis=0), jnp.sum(pq[:, 0, :], axis=0)


def _col_stats_kernel(x_ref, ps_ref, pq_ref):
    x = x_ref[...]
    ps_ref[0] = jnp.sum(x, axis=0, keepdims=True)
    pq_ref[0] = jnp.sum(x * x, axis=0, keepdims=True)


def col_stats(x, tm=512):
    """Per-column sum / sum-of-squares of (M, C); only needed after pooling (everywhere
    else the producing kernel already emitted the stats)."""
    m, c = x.shape
    if m <= tm:
        blk_m, grid_m, xp = m, 1, x
    else:
        m_pad = _round_up(m, tm)
        xp = jnp.pad(x, ((0, m_pad - m), (0, 0)))     # zero rows do not change sums
        blk_m, grid_m = tm, m_pad // tm
    ps, pq = pl.pallas_call(
        _col_stats_kernel,
        grid=(grid_m,),
        in_specs=[pl.BlockSpec((blk_m, c), lambda i: (i, 0))],
        out_specs=(
            pl.BlockSpec((1, 1, c), lambda i: (i, 0, 0)),
            pl.BlockSpec((1, 1, c), lambda i: (i, 0, 0)),
        ),
        out_shape=(
            jax.ShapeDtypeStruct((grid_m, 1, c), jnp.float32),
            jax.ShapeDtypeStruct((grid_m, 1, c), jnp.float32),
        ),
        compiler_params=_cparams(("parallel",)),
    )(xp)
    return jnp.sum(ps[:, 0, :], axis=0), jnp.sum(pq[:, 0, :], axis=0)


# ------------------------------- JAX glue -----------------------------------


def _bn_scale_shift_from_stats(ch_sum, ch_sq, count, gamma, beta, eps=1e-5):
    """Training-mode BatchNorm1d (biased variance) folded to per-channel scale/shift,
    computed from carried per-channel sum / sum-of-squares."""
    mean = ch_sum / count
    var = jnp.maximum(ch_sq / count - mean * mean, 0.0)
    scale = gamma * jax.lax.rsqrt(var + eps)
    shift = beta - mean * scale
    return scale, shift


def avg_pool_nlc(x, kernel, stride, padding):
    # TODO(synk): AvgPool1d kept as tiny XLA glue (strided mean); the hot path is the
    # conv matmul kernels.
    n, l, c = x.shape
    if padding > 0:
        x = jnp.pad(x, ((0, 0), (padding, padding), (0, 0)))
    lp = l + 2 * padding
    lout = (lp - kernel) // stride + 1
    acc = x[:, 0:(lout - 1) * stride + 1:stride, :]
    for t in range(1, kernel):
        acc = acc + x[:, t:t + (lout - 1) * stride + 1:stride, :]
    return acc / kernel


def input_stage(x_ncl, params, cfg):
    x = jnp.transpose(x_ncl, (0, 2, 1)).astype(jnp.float32)      # (N, L, Cin)
    pad = cfg['input_conv_padding']
    stride = cfg['input_conv_stride']
    cin = x.shape[-1]
    w = jnp.transpose(params['conv_input_w'], (2, 1, 0)).astype(jnp.bfloat16)
    if stride == 1:
        if pad > 0:
            x = jnp.pad(x, ((0, 0), (pad, pad), (0, 0)))
        y, _, _ = tap_conv(x, jnp.ones((cin,), jnp.float32),
                           jnp.zeros((cin,), jnp.float32), w,
                           params['conv_input_b'], relu=False)
    else:
        # TODO(synk): strided input conv falls back to XLA conv glue (not hit by the demo
        # config; the Pallas tap-conv kernel assumes stride 1).
        y = jax.lax.conv_general_dilated(
            x_ncl.astype(jnp.bfloat16), params['conv_input_w'].astype(jnp.bfloat16),
            (stride,), [(pad, pad)], dimension_numbers=('NCH', 'OIH', 'NCH'),
            preferred_element_type=jnp.float32)
        y = jnp.transpose(y + params['conv_input_b'][None, :, None], (0, 2, 1))
    y = avg_pool_nlc(y, cfg['input_pool_kernel_size'], cfg['input_pool_stride'],
                     cfg['input_pool_padding'])
    n, l, c = y.shape
    s, q = col_stats(y.reshape(n * l, c))
    return y, s, q


def dense_block(feat0, ch_sum, ch_sq, layer_params, kernel_size, growth):
    n, l, c0 = feat0.shape
    k = kernel_size
    pad = (k - 1) // 2
    l1 = l - k + 1
    c_final = c0 + len(layer_params) * growth
    # Pre-allocated channels-last block buffer replaces the per-layer torch.cat.
    feat = jnp.zeros((n, l, c_final), jnp.float32)
    feat = feat.at[:, :, :c0].set(feat0)
    c = c0
    for p in layer_params:
        # batch_norm_b + relu_b + conv_b (k-tap, padding=0), stats of h fused in-kernel.
        scale_b, shift_b = _bn_scale_shift_from_stats(
            ch_sum, ch_sq, n * l, p['bn_b_gamma'], p['bn_b_beta'])
        w_b = jnp.transpose(p['conv_b_w'], (2, 1, 0)).astype(jnp.bfloat16)
        h, hs, hq = tap_conv(feat[:, :, :c], scale_b, shift_b, w_b,
                             jnp.zeros((4 * c,), jnp.float32), relu=True)
        # batch_norm + relu + 1x1 conv, stats of the growth channels fused in-kernel.
        # The 1x1 conv's padding (bias=False) only appends exact-zero rows, so the result
        # is written into the centre of the block buffer and the pad rows stay zero.
        scale_h, shift_h = _bn_scale_shift_from_stats(
            hs, hq, n * l1, p['bn_gamma'], p['bn_beta'])
        w1 = p['conv_w'][:, :, 0].T.astype(jnp.bfloat16)
        y, ys, yq = bn_relu_matmul_stats(h.reshape(n * l1, 4 * c),
                                         scale_h, shift_h, w1)
        feat = feat.at[:, pad:pad + l1, c:c + growth].set(y.reshape(n, l1, growth))
        # carried stats for the new channels (zero pad rows contribute nothing).
        ch_sum = jnp.concatenate([ch_sum, ys])
        ch_sq = jnp.concatenate([ch_sq, yq])
        c += growth
    return feat, ch_sum, ch_sq


def transition(feat, ch_sum, ch_sq, p, pool_k, pool_s):
    n, l, c = feat.shape
    scale, shift = _bn_scale_shift_from_stats(ch_sum, ch_sq, n * l,
                                              p['bn_gamma'], p['bn_beta'])
    w1 = p['conv_w'][:, :, 0].T.astype(jnp.bfloat16)
    cout = w1.shape[1]
    y, _, _ = bn_relu_matmul_stats(feat.reshape(n * l, c), scale, shift, w1)
    y = avg_pool_nlc(y.reshape(n, l, cout), pool_k, pool_s, 0)
    n2, l2, _ = y.shape
    s, q = col_stats(y.reshape(n2 * l2, cout))
    return y, s, q


def sedensenet_forward(params, x, cfg):
    # TODO(synk): SELayer / SqueezeExcitationBlock are undefined in the provided source,
    # so the SE gating is omitted; this is the DenseNet backbone forward.
    feat, s, q = input_stage(x, params, cfg)
    for idx in range(cfg['block_number']):
        if idx > 0:
            feat, s, q = transition(feat, s, q, params['transitions'][idx - 1],
                                    cfg['transition_pool_kernel_sizes'][idx - 1],
                                    cfg['transition_pool_strides'][idx - 1])
        feat, s, q = dense_block(feat, s, q, params['blocks'][idx],
                                 cfg['block_kernel_sizes'][idx], cfg['growth_rate'])
    return jnp.transpose(feat, (0, 2, 1))            # back to (N, C, L)


# ----------------------------- parameter init -------------------------------
# NOTE: dropout=0.0 => the nn.Dropout module is never constructed in the reference,
# so there is nothing to implement for it.


def init_densenet_params(key, cfg):
    keys = iter(jax.random.split(key, 256))
    g = cfg['growth_rate']
    out_c = 2 * g
    params = {
        'conv_input_w': 0.1 * jax.random.normal(
            next(keys), (out_c, cfg['in_channels'], cfg['input_conv_kernel_size']),
            jnp.float32),
        'conv_input_b': 0.1 * jax.random.normal(next(keys), (out_c,), jnp.float32),
        'blocks': [], 'transitions': [],
    }
    c = out_c
    for idx in range(cfg['block_number']):
        if idx > 0:
            c_out = int(floor(cfg['compression'] * c)) \
                if 0.0 <= cfg['compression'] < 1.0 else c
            params['transitions'].append({
                'bn_gamma': jnp.ones((c,), jnp.float32),
                'bn_beta': jnp.zeros((c,), jnp.float32),
                'conv_w': 0.1 * jax.random.normal(next(keys), (c_out, c, 1), jnp.float32),
            })
            c = c_out
        hidden = []
        k = cfg['block_kernel_sizes'][idx]
        for j in range(cfg['block_hidden_layers'][idx]):
            cj = c + j * g
            hidden.append({
                'bn_b_gamma': jnp.ones((cj,), jnp.float32),
                'bn_b_beta': jnp.zeros((cj,), jnp.float32),
                'conv_b_w': 0.1 * jax.random.normal(next(keys), (4 * cj, cj, k), jnp.float32),
                'bn_gamma': jnp.ones((4 * cj,), jnp.float32),
                'bn_beta': jnp.zeros((4 * cj,), jnp.float32),
                'conv_w': 0.1 * jax.random.normal(next(keys), (g, 4 * cj, 1), jnp.float32),
            })
        params['blocks'].append(hidden)
        c = c + cfg['block_hidden_layers'][idx] * g
    return params


# ----------------------- pure-JAX reference (checking) ----------------------
# Structurally independent reference (NCL layout, lax.conv, explicit 3-D BatchNorm,
# reduce_window pooling, concatenate-based growth).  The ONLY deliberate match with the
# kernels is the MXU precision policy (bf16 conv operands, f32 accumulation) that the
# perf review asked for, so the comparison isolates implementation correctness.


def _ref_bn_relu(x, gamma, beta, eps=1e-5):
    mean = jnp.mean(x, axis=(0, 2), keepdims=True)
    var = jnp.mean(jnp.square(x - mean), axis=(0, 2), keepdims=True)
    xn = (x - mean) * jax.lax.rsqrt(var + eps) * gamma[None, :, None] + beta[None, :, None]
    return jnp.maximum(xn, 0.0)


def _ref_conv1d(x, w, b, stride, padding):
    out = jax.lax.conv_general_dilated(
        x.astype(jnp.bfloat16), w.astype(jnp.bfloat16), (stride,),
        [(padding, padding)], dimension_numbers=('NCH', 'OIH', 'NCH'),
        preferred_element_type=jnp.float32)
    return out if b is None else out + b[None, :, None]


def _ref_avgpool(x, k, s, p):
    if p > 0:
        x = jnp.pad(x, ((0, 0), (0, 0), (p, p)))
    return jax.lax.reduce_window(x, 0.0, jax.lax.add, (1, 1, k), (1, 1, s), 'VALID') / k


def densenet_reference(params, x, cfg):
    out = _ref_conv1d(x, params['conv_input_w'], params['conv_input_b'],
                      cfg['input_conv_stride'], cfg['input_conv_padding'])
    out = _ref_avgpool(out, cfg['input_pool_kernel_size'],
                       cfg['input_pool_stride'], cfg['input_pool_padding'])
    for idx in range(cfg['block_number']):
        if idx > 0:
            tp = params['transitions'][idx - 1]
            t = _ref_bn_relu(out, tp['bn_gamma'], tp['bn_beta'])
            t = _ref_conv1d(t, tp['conv_w'], None, 1, 0)
            out = _ref_avgpool(t, cfg['transition_pool_kernel_sizes'][idx - 1],
                               cfg['transition_pool_strides'][idx - 1], 0)
        k = cfg['block_kernel_sizes'][idx]
        for p in params['blocks'][idx]:
            h = _ref_bn_relu(out, p['bn_b_gamma'], p['bn_b_beta'])
            h = _ref_conv1d(h, p['conv_b_w'], None, 1, 0)
            h = _ref_bn_relu(h, p['bn_gamma'], p['bn_beta'])
            h = _ref_conv1d(h, p['conv_w'], None, 1, (k - 1) // 2)
            out = jnp.concatenate([out, h], axis=1)
    return out


# ---------------------------------- main -------------------------------------

if __name__ == "__main__":
    cfg = dict(
        in_channels=4, growth_rate=8, block_number=2,
        input_conv_kernel_size=3, input_conv_stride=1, input_conv_padding=1,
        input_pool_kernel_size=2, input_pool_stride=2, input_pool_padding=0,
        block_kernel_sizes=[3, 3], block_hidden_layers=[2, 2],
        transition_pool_kernel_sizes=[2], transition_pool_strides=[2],
        bottleneck=True, compression=1.0, dropout=0.0)

    key = jax.random.PRNGKey(0)
    pkey, xkey, skey = jax.random.split(key, 3)
    params = init_densenet_params(pkey, cfg)
    x = jax.random.normal(xkey, (2, cfg['in_channels'], 16), jnp.float32)   # (N, C, L)

    # --- exercise the tiled / masked multi-block path of the fused BN+ReLU matmul ---
    ks = jax.random.split(skey, 4)
    xs = jax.random.normal(ks[0], (1000, 384), jnp.float32)
    ws = (0.1 * jax.random.normal(ks[1], (384, 256), jnp.float32)).astype(jnp.bfloat16)
    sc = jax.random.uniform(ks[2], (384,), jnp.float32, minval=0.5, maxval=1.5)
    sh = 0.1 * jax.random.normal(ks[3], (384,), jnp.float32)
    yt, ysum, ysq = bn_relu_matmul_stats(xs, sc, sh, ws, tm=256)
    yt = jax.block_until_ready(yt)
    yref = jnp.dot(jnp.maximum(xs * sc[None] + sh[None], 0.0).astype(jnp.bfloat16),
                   ws, preferred_element_type=jnp.float32)
    assert float(jnp.max(jnp.abs(yt - yref))) < 1e-2
    assert float(jnp.max(jnp.abs(ysum - jnp.sum(yt, axis=0)))) < 1e-2 * (
        float(jnp.max(jnp.abs(ysum))) + 1.0)
    assert float(jnp.max(jnp.abs(ysq - jnp.sum(yt * yt, axis=0)))) < 1e-2 * (
        float(jnp.max(jnp.abs(ysq))) + 1.0)

    # --- full network forward vs. the numerics-matched pure-JAX reference ---
    fwd = jax.jit(functools.partial(sedensenet_forward, cfg=cfg))
    out = jax.block_until_ready(fwd(params, x))
    ref = densenet_reference(params, x, cfg)
    assert out.shape == ref.shape == (2, 48, 4), (out.shape, ref.shape)
    max_err = float(jnp.max(jnp.abs(out - ref)))
    assert max_err < 2e-2, max_err

    print("KERNEL_OK")
</pallas_src>

<mosaic_0001>
module attributes {stable_mosaic.version = 11 : i64} {
  func.func @_bn_relu_mm_kernel(%arg0: i32, %arg1: memref<256x384xf32, #tpu.memory_space<vmem>>, %arg2: memref<1x384xf32, #tpu.memory_space<vmem>>, %arg3: memref<1x384xf32, #tpu.memory_space<vmem>>, %arg4: memref<384x256xbf16, #tpu.memory_space<vmem>>, %arg5: memref<256x256xf32, #tpu.memory_space<vmem>>, %arg6: memref<1x1x256xf32, #tpu.memory_space<vmem>>, %arg7: memref<1x1x256xf32, #tpu.memory_space<vmem>>) attributes {dimension_semantics = [#tpu.dimension_semantics<parallel>], iteration_bounds = array<i64: 4>, scalar_prefetch = 0 : i64, scratch_operands = 0 : i64, tpu.core_type = #tpu.core_type<tc>, window_params = [{transform_indices = @transform_0, window_bounds = array<i64: 256, 384>}, {pipeline_mode = #tpu.pipeline_mode<synchronous>, transform_indices = @transform_1, window_bounds = array<i64: 1, 384>}, {pipeline_mode = #tpu.pipeline_mode<synchronous>, transform_indices = @transform_2, window_bounds = array<i64: 1, 384>}, {pipeline_mode = #tpu.pipeline_mode<synchronous>, transform_indices = @transform_3, window_bounds = array<i64: 384, 256>}, {transform_indices = @transform_4, window_bounds = array<i64: 256, 256>}, {transform_indices = @transform_5, window_bounds = array<i64: 1, 1, 256>}, {transform_indices = @transform_6, window_bounds = array<i64: 1, 1, 256>}]} {
    %c0 = arith.constant 0 : index
    %c0_0 = arith.constant 0 : index
    %0 = vector.load %arg1[%c0, %c0_0] : memref<256x384xf32, #tpu.memory_space<vmem>>, vector<256x384xf32>
    %c0_1 = arith.constant 0 : index
    %c0_2 = arith.constant 0 : index
    %1 = vector.load %arg2[%c0_1, %c0_2] : memref<1x384xf32, #tpu.memory_space<vmem>>, vector<1x384xf32>
    %2 = vector.broadcast %1 : vector<1x384xf32> to vector<256x384xf32>
    %3 = arith.mulf %0, %2 : vector<256x384xf32>
    %c0_3 = arith.constant 0 : index
    %c0_4 = arith.constant 0 : index
    %4 = vector.load %arg3[%c0_3, %c0_4] : memref<1x384xf32, #tpu.memory_space<vmem>>, vector<1x384xf32>
    %5 = vector.broadcast %4 : vector<1x384xf32> to vector<256x384xf32>
    %6 = arith.addf %3, %5 : vector<256x384xf32>
    %cst = arith.constant 0.000000e+00 : f32
    %7 = vector.broadcast %cst : f32 to vector<256x384xf32>
    %8 = arith.maximumf %6, %7 : vector<256x384xf32>
    %9 = tpu.iota {dimensions = array<i32: 0>} : vector<256x384xi32>
    %c256_i32 = arith.constant 256 : i32
    %10 = arith.muli %arg0, %c256_i32 : i32
    %11 = vector.broadcast %10 : i32 to vector<256x384xi32>
    %12 = arith.addi %9, %11 : vector<256x384xi32>
    %c1000_i32 = arith.constant 1000 : i32
    %13 = vector.broadcast %c1000_i32 : i32 to vector<256x384xi32>
    %14 = arith.cmpi slt, %12, %13 : vector<256x384xi32>
    %cst_5 = arith.constant 0.000000e+00 : f32
    %15 = vector.broadcast %cst_5 : f32 to vector<256x384xf32>
    %16 = arith.select %14, %8, %15 : vector<256x384xi1>, vector<256x384xf32>
    %17 = arith.truncf %16 : vector<256x384xf32> to vector<256x384xbf16>
    %c0_6 = arith.constant 0 : index
    %c0_7 = arith.constant 0 : index
    %18 = vector.load %arg4[%c0_6, %c0_7] : memref<384x256xbf16, #tpu.memory_space<vmem>>, vector<384x256xbf16>
    %cst_8 = arith.constant dense<0.000000e+00> : vector<256x256xf32>
    %19 = tpu.matmul %17, %18, %cst_8 {dimension_numbers = #tpu.dot_dimension_numbers<[1], [0], [0], [1], [0, 0, 1, 1], [], []>} : vector<256x384xbf16>, vector<384x256xbf16>, vector<256x256xf32> -> vector<256x256xf32>
    %c0_9 = arith.constant 0 : index
    %c0_10 = arith.constant 0 : index
    %20 = vector.load %arg5[%c0_9, %c0_10] : memref<256x256xf32, #tpu.memory_space<vmem>>, vector<256x256xf32>
    tpu.vector_store %arg5[%c0_9, %c0_10], %19 {strides = array<i32>} : memref<256x256xf32, #tpu.memory_space<vmem>>, vector<256x256xf32>,
    %cst_11 = arith.constant dense<0.000000e+00> : vector<256xf32>
    %21 = vector.multi_reduction <add>, %19, %cst_11 [0] : vector<256x256xf32> to vector<256xf32>
    %22 = vector.shape_cast %21 : vector<256xf32> to vector<1x256xf32>
    %c0_12 = arith.constant 0 : index
    %c0_13 = arith.constant 0 : index
    %c0_14 = arith.constant 0 : index
    %23 = vector.load %arg6[%c0_12, %c0_13, %c0_14] : memref<1x1x256xf32, #tpu.memory_space<vmem>>, vector<1x1x256xf32>
    %24 = vector.shape_cast %23 : vector<1x1x256xf32> to vector<1x256xf32>
    %25 = vector.shape_cast %22 : vector<1x256xf32> to vector<1x1x256xf32>
    tpu.vector_store %arg6[%c0_12, %c0_13, %c0_14], %25 {strides = array<i32>} : memref<1x1x256xf32, #tpu.memory_space<vmem>>, vector<1x1x256xf32>,
    %26 = arith.mulf %19, %19 : vector<256x256xf32>
    %cst_15 = arith.constant dense<0.000000e+00> : vector<256xf32>
    %27 = vector.multi_reduction <add>, %26, %cst_15 [0] : vector<256x256xf32> to vector<256xf32>
    %28 = vector.shape_cast %27 : vector<256xf32> to vector<1x256xf32>
    %c0_16 = arith.constant 0 : index
    %c0_17 = arith.constant 0 : index
    %c0_18 = arith.constant 0 : index
    %29 = vector.load %arg7[%c0_16, %c0_17, %c0_18] : memref<1x1x256xf32, #tpu.memory_space<vmem>>, vector<1x1x256xf32>
    %30 = vector.shape_cast %29 : vector<1x1x256xf32> to vector<1x256xf32>
    %31 = vector.shape_cast %28 : vector<1x256xf32> to vector<1x1x256xf32>
    tpu.vector_store %arg7[%c0_16, %c0_17, %c0_18], %31 {strides = array<i32>} : memref<1x1x256xf32, #tpu.memory_space<vmem>>, vector<1x1x256xf32>,
    return
  }
  func.func @transform_0(%arg0: i32) -> (i32, i32) {
    %c0_i32 = arith.constant 0 : i32
    %c0_i32_0 = arith.constant 0 : i32
    return %arg0, %c0_i32 : i32, i32
  }
  func.func @transform_1(%arg0: i32) -> (i32, i32) {
    %c0_i32 = arith.constant 0 : i32
    %c0_i32_0 = arith.constant 0 : i32
    %c0_i32_1 = arith.constant 0 : i32
    return %c0_i32, %c0_i32_0 : i32, i32
  }
  func.func @transform_2(%arg0: i32) -> (i32, i32) {
    %c0_i32 = arith.constant 0 : i32
    %c0_i32_0 = arith.constant 0 : i32
    %c0_i32_1 = arith.constant 0 : i32
    return %c0_i32, %c0_i32_0 : i32, i32
  }
  func.func @transform_3(%arg0: i32) -> (i32, i32) {
    %c0_i32 = arith.constant 0 : i32
    %c0_i32_0 = arith.constant 0 : i32
    %c0_i32_1 = arith.constant 0 : i32
    return %c0_i32, %c0_i32_0 : i32, i32
  }
  func.func @transform_4(%arg0: i32) -> (i32, i32) {
    %c0_i32 = arith.constant 0 : i32
    %c0_i32_0 = arith.constant 0 : i32
    return %arg0, %c0_i32 : i32, i32
  }
  func.func @transform_5(%arg0: i32) -> (i32, i32, i32) {
    %c0_i32 = arith.constant 0 : i32
    %c0_i32_0 = arith.constant 0 : i32
    %c0_i32_1 = arith.constant 0 : i32
    return %arg0, %c0_i32, %c0_i32_0 : i32, i32, i32
  }
  func.func @transform_6(%arg0: i32) -> (i32, i32, i32) {
    %c0_i32 = arith.constant 0 : i32
    %c0_i32_0 = arith.constant 0 : i32
    %c0_i32_1 = arith.constant 0 : i32
    return %arg0, %c0_i32, %c0_i32_0 : i32, i32, i32
  }
}

</mosaic_0001>

<bundles_post_ra>
// kernel: tpu_custom_call.1
= control target key start
LH: loop header
LB: loop body
LE: loop exit
PB: predicated region body
PF: predicated region fallthrough
CT: control target
= control target key end

     0   :  { %12 = vsyncpa [#allocation3], 0  ;;  %s4190_s0 = inlined_call_operand.hbm [shape: f32[1024,384], index: 0, kind: input, shape index: {}]   ;;  %s4191_s1 = inlined_call_operand.hbm [shape: f32[1,384], index: 1, kind: input, shape index: {}]   ;;  %s4192_s2 = inlined_call_operand.hbm [shape: f32[1,384], index: 2, kind: input, shape index: {}]   ;;  %s4193_s3 = inlined_call_operand.hbm [shape: bf16[384,256], index: 3, kind: input, shape index: {}]   ;;  %s4194_s4 = inlined_call_operand.hbm [shape: f32[1024,256], index: 4, kind: output, shape index: {0}]   ;;  %s4195_s5 = inlined_call_operand.hbm [shape: f32[4,1,256], index: 5, kind: output, shape index: {1}]   ;;  %s4196_s6 = inlined_call_operand.hbm [shape: f32[4,1,256], index: 6, kind: output, shape index: {2}]  }
   0x1   :  { %14 = vsyncpa [#allocation3 + $0x1], 0 }
   0x2   :  { %15 = vsyncpa [#allocation6], 0 }
   0x3   :  { %16 = vsyncpa [#allocation9], 0 }
   0x4   :  { %17 = vsyncpa [#allocation4], 0 }
   0x5   :  { %19 = vsyncpa [#allocation4 + $0x1], 0 }
   0x6   :  { %20 = vsyncpa [#allocation12], 0 }
   0x7   :  { %22 = vsyncpa [#allocation12 + $0x1], 0  ;;  %s2882_s21 = smov 0   ;;  %s2884_s22 = smov 0  }
   0x8   :  { %s2886_s23 = smov 0   ;;  %s2888_s24 = smov 0  }
   0x9 LB: > { %s2903_s25 = sadd.s32 4294967295, %s2830_s24   ;;  %s4199_s26 = sadd.s32 4294967294, %s2830_s24   ;;  %s2830_s24 = sphi %s2888_s24, %s4255_s24   ;;  %s2826_s23 = sphi %s2886_s23, %s4254_s23   ;;  %s2822_s22 = sphi %s2884_s22, %s4253_s22   ;;  %s2818_s21 = sphi %s2882_s21, %s4252_s21  }
   0xa   : > { %p48_p0 = scmp.ne.s32.totalorder %s2822_s22, %s2818_s21  ;;  %p4197_p1 = scmp.eq.s32.totalorder %s2903_s25, 0 }
   0xb   : > { %p141_p3 = scmp.eq.s32.totalorder %s4199_s26, 3  ;;  %p2202_p5 = scmp.ge.s32.totalorder %s2830_s24, 1 }
   0xc   : > { %p2914_p4 = por %p4197_p1, %p48_p0  ;;  %p200_p7 = scmp.lt.s32.totalorder %s2830_s24, 5 }
   0xd   : > { %p2919_p6 = por %p141_p3, %p48_p0  ;;  %s2832_s30 = smov [#allocation5]  }
   0xe   : > { %s4202_s27 = scalar_select %p2914_p4, 1, 0 }
   0xf   : > { %s4203_s28 = scalar_select %p2919_p6, 1, 0 }
  0x10   : > { %p2924_p8 = pnand %p2202_p5, %p200_p7  ;;  %s213_s7 = sshll.u32 %s2832_s30, 4  ;;  %s214_s7 = int_to_ptr.vmem [resolvable:$true] %s213_s7 }
  0x11   : > { %s2833_s8 = smov [#allocation7]   ;;  %s2834_s11 = smov [#allocation8]  }
  0x12   : > { %s4204_s29 = scalar_select %p2924_p8, 1, 0 }
  0x13   : > { %p2449_p9 = pneg %p2924_p8  ;;  %s224_s9 = sshll.u32 %s2833_s8, 4  ;;  %s225_s9 = int_to_ptr.vmem [resolvable:$true] %s224_s9 }
  0x14   : > { %s234_s12 = sshll.u32 %s2834_s11, 4  ;;  %s2607_s13 = scalar_lea.vmem %s214_s7, 48  ;;  %s2936_s12 = int_to_ptr.vmem [resolvable:$true] %s234_s12 }
  0x15   : > { %p2932_p10 = pnand %p2449_p9, %p4197_p1  ;;  %p2608_p12 = scmp.ne.s32.totalorder %s214_s7, %s2607_s13 }
  0x16   : > { %s2614_s14 = scalar_lea.vmem %s214_s7, 64  ;;  %p2615_p3 = scmp.lt.s32.totalorder %s214_s7, %s214_s7 }
  0x17   : > { %p2598_p11 = pneg %p2932_p10  ;;  %p2616_p5 = scmp.lt.s32.totalorder %s2614_s14, %s2607_s13 }
  0x19   : > { %p2610_p13 = pnand %p2608_p12, %p2598_p11  ;;  %p2617_p7 = por %p2616_p5, %p2615_p3 }
  0x1b   : > { %p2611_p0 = pneg %p2610_p13 }
  0x1d   : > { %p2618_p9 = pnand %p2617_p7, %p2611_p0 }
  0x1f   : > { %2621 = shalt.err (!%p2618_p9)
}
  0x20   : > { %2452 = dma.hbm_to_vmem [thread:$0]  (!%p2932_p10), %s4191_s1, 48, %s214_s7, [#allocation6]  }
  0x21   : > { %s2633_s17 = scalar_lea.vmem %s225_s9, 48  ;;  %s2640_s18 = scalar_lea.vmem %s225_s9, 64 }
  0x22   : > { %p2634_p1 = scmp.ne.s32.totalorder %s225_s9, %s2633_s17  ;;  %p2641_p13 = scmp.lt.s32.totalorder %s225_s9, %s225_s9 }
  0x23   : > { %p2642_p6 = scmp.lt.s32.totalorder %s2640_s18, %s2633_s17 }
  0x24   : > { %p2636_p2 = pnand %p2634_p1, %p2598_p11 }
  0x25   : > { %p2643_p4 = por %p2642_p6, %p2641_p13 }
  0x26   : > { %p2637_p12 = pneg %p2636_p2 }
  0x28   : > { %p2644_p3 = pnand %p2643_p4, %p2637_p12 }
  0x2a   : > { %2647 = shalt.err (!%p2644_p3)
}
  0x2b   : > { %2455 = dma.hbm_to_vmem [thread:$0]  (!%p2932_p10), %s4192_s2, 48, %s225_s9, [#allocation6]  }
  0x2c   : > { %s2659_s30 = scalar_lea.vmem %s2936_s12, 6144  ;;  %p2667_p6 = scmp.lt.s32.totalorder %s2936_s12, %s2936_s12 }
  0x2d   : > { %p2660_p0 = scmp.ne.s32.totalorder %s2936_s12, %s2659_s30  ;;  %p2668_p4 = scmp.lt.s32.totalorder %s2659_s30, %s2659_s30 }
  0x2f   : > { %p2662_p1 = pnand %p2660_p0, %p2598_p11  ;;  %p2669_p5 = por %p2668_p4, %p2667_p6 }
  0x31   : > { %p2663_p2 = pneg %p2662_p1 }
  0x33   : > { %p2670_p7 = pnand %p2669_p5, %p2663_p2 }
  0x35   : > { %2673 = shalt.err (!%p2670_p7)
}
  0x36   : > { %s2835_s7 = smov 128   ;;  %s2836_s8 = smov 8  }
  0x37   : > { %2458 = dma.hbm_to_vmem [thread:$0]  (!%p2932_p10), %s4193_s3, 6144, %s2936_s12, [#allocation9], %s2835_s7, %s2835_s7, %s2836_s8  }
  0x38   : > { %s2970_s13 = sadd.s32 1, %s2830_s24   ;;  %s35_s15 = sadd.s32 1, %s2826_s23 }
  0x39   : > { %s32_s14 = ssub.s32 %s2830_s24, %s2970_s13  ;;  %p42_p9 = scmp.ne.s32.totalorder %s2826_s23, %s2822_s22 }
  0x3a   : > { %p33_p11 = scmp.eq.s32.totalorder %s32_s14, 0  ;;  %p43_p12 = scmp.eq.s32.totalorder %s2830_s24, 0 }
  0x3b   : > { %p2476_p13 = scmp.lt.s32.totalorder %s2830_s24, 4  ;;  %p4206_p0 = scmp.eq.s32.totalorder %s2903_s25, 3 }
  0x3c   : > { %s2980_s16 = scalar_select %p33_p11, %s2826_s23, %s35_s15  }
  0x3d   : > { %p44_p3 = por %p43_p12, %p42_p9  ;;  %p2984_p1 = por %p4206_p0, %p42_p9 }
  0x3e   : > { %s248_s10 = sand.u32 1, %s2826_s23   ;;  %s2427_s18 = smul.u32 12288, %s2830_s24 }
  0x3f   : > { %s4207_s17 = scalar_select %p2984_p1, 1, 0 }
  0x40   : > { %s2426_s12 = smul.u32 768, %s248_s10  ;;  %s2993_s30 = scalar_lea.hbm %s4190_s0, %s2427_s18 }
  0x41   : > { %p2995_p10 = pnand %p2476_p13, %p44_p3  ;;  %s3001_s11 = scalar_lea.sflag [#allocation3], %s248_s10 }
  0x42   : > { %s252_s8 = scalar_lea.vmem [#allocation2], %s2426_s12  ;;  %s2674_s14 = scalar_lea.hbm %s2993_s30, 12288 }
  0x43   : > { %s260_s9 = sshll.u32 %s252_s8, 4  ;;  %p2675_p2 = scmp.ne.s32.totalorder %s2993_s30, %s2674_s14  ;;  %s2999_s9 = int_to_ptr.vmem [resolvable:$true] %s260_s9 }
  0x44   : > { %p2676_p6 = pneg %p2995_p10  ;;  %s2679_s19 = scalar_lea.hbm %s4190_s0, 49152 }
  0x45   : > { %p2680_p7 = scmp.lt.s32.totalorder %s2993_s30, %s4190_s0  ;;  %p2681_p11 = scmp.lt.s32.totalorder %s2679_s19, %s2674_s14 }
  0x46   : > { %p2677_p4 = pnand %p2676_p6, %p2675_p2 }
  0x47   : > { %p2682_p9 = por %p2681_p11, %p2680_p7 }
  0x48   : > { %p2678_p5 = pneg %p2677_p4 }
  0x4a   : > { %p2683_p12 = pnand %p2682_p9, %p2678_p5 }
  0x4c   : > { %2686 = shalt.err (!%p2683_p12)
}
  0x4d   : > { %s2687_s10 = scalar_lea.vmem %s2999_s9, 12288  ;;  %s2837_s12 = smov [#allocation2]  }
  0x4e   : > { %p2688_p13 = scmp.ne.s32.totalorder %s2999_s9, %s2687_s10  ;;  %s2692_s8 = sshll.u32 %s2837_s12, 4  ;;  %s2693_s8 = int_to_ptr.vmem [resolvable:$false] %s2692_s8 }
  0x4f   : > { %s2694_s15 = scalar_lea.vmem %s2693_s8, 24576  ;;  %p2695_p2 = scmp.lt.s32.totalorder %s2999_s9, %s2693_s8 }
  0x50   : > { %p2690_p3 = pnand %p2688_p13, %p2676_p6  ;;  %p2696_p4 = scmp.lt.s32.totalorder %s2694_s15, %s2687_s10 }
  0x52   : > { %p2691_p0 = pneg %p2690_p3  ;;  %p2697_p1 = por %p2696_p4, %p2695_p2 }
  0x54   : > { %p2698_p8 = pnand %p2697_p1, %p2691_p0 }
  0x56   : > { %2701 = shalt.err (!%p2698_p8)
}
  0x57   : > { %s2838_s26 = smov 384   ;;  %s2839_s14 = smov 24  }
  0x58   : > { %2462 = dma.hbm_to_vmem [thread:$0]  (!%p2995_p10), %s2993_s30, 12288, %s2999_s9, %s3001_s11, %s2838_s26, %s2838_s26, %s2839_s14  }
  0x59   : > { %p4209_p6 = scmp.ne.s32.totalorder %s4204_s29, 0 }
  0x5a   : > { %s3025_s18 = sand.u32 (!%p4209_p6), 1, %s2822_s22   ;;  %p4210_p8 = scmp.ne.s32.totalorder (!%p4209_p6), %s4202_s27, 0 }
  0x5b   : > { %272 = sbr.rel (%p4209_p6) target bundleno = 554 (0x22a), region = 36  ;;  %s275_s20 = scalar_lea.sflag (!%p4209_p6), [#allocation3], %s3025_s18 }
  0x5c   : > { %s2428_s19 = smul.u32 (!%p4209_p6), 768, %s3025_s18 }
  0x5e   : > { %s3029_s10 = scalar_lea.vmem (!%p4209_p6), [#allocation2], %s2428_s19 }
  0x60   : > { %2797 = dma.done.wait (%p4210_p8), %s275_s20, 12288  }
  0x61   : > { %2799 = vsyncadd (%p4210_p8), %s275_s20, 4294955008  ;;  %p4211_p1 = scmp.eq.s32.totalorder %s2903_s25, 0 }
  0x63   : > { %2801 = dma.done.wait (%p4211_p1), [#allocation6], 96   ;;  %p4212_p10 = pmov %p4211_p1 }
  0x64   : > { %p4213_p5 = pmov %p4211_p1 }
  0x65   : > { %2803 = vsyncadd (%p4212_p10), [#allocation6], 4294967200 }
  0x66   : > { %2805 = dma.done.wait (%p4213_p5), [#allocation9], 6144   ;;  %p4214_p7 = pmov %p4211_p1 }
  0x67   : > { %v2840_v0 = vmov 0   ;;  %v2524_v1 = vld [vmem:[#allocation8 + $0x74] ss:$8 sps:$4 sm:$0xff]   ;;  %v2526_v2 = vld [vmem:[#allocation8 + $0x70] ss:$8 sps:$4 sm:$0xff]   ;;  %v430_v21 = vlaneseq  ;;  %s2217_s27 = sshll.u32 %s2903_s25, 8 }
  0x68   : > { %2807 = vsyncadd (%p4214_p7), [#allocation9], 4294961152  ;;  %1506 = vmatprep.mubr.bf16.mxu1 %v2840_v0  ;;  %1281 = vmatprep.subr.bf16.mxu0 %v2524_v1  ;;  %v2527_v3 = vld [vmem:[#allocation8 + $0x64] ss:$8 sps:$4 sm:$0xff]   ;;  %v2529_v4 = vld [vmem:[#allocation8 + $0x60] ss:$8 sps:$4 sm:$0xff]   ;;  %v3052_v38 = vstv %s2217_s27 }
  0x69   : > { %1282 = vmatpush1.bf16.msra.mxu0 %v2526_v2  ;;  %v2530_v5 = vld [vmem:[#allocation8 + $0x54] ss:$8 sps:$4 sm:$0xff]   ;;  %v2532_v6 = vld [vmem:[#allocation8 + $0x50] ss:$8 sps:$4 sm:$0xff]   ;;  %v2533_v7 = vld [vmem:[#allocation8 + $0x44] ss:$8 sps:$4 sm:$0xff]  }
  0x6a   : > { %1283 = vmatprep.subr.bf16.mxu0 %v2527_v3  ;;  %v2545_v8 = vld [vmem:[#allocation8 + $0x174] ss:$8 sps:$4 sm:$0xff]   ;;  %v2547_v9 = vld [vmem:[#allocation8 + $0x170] ss:$8 sps:$4 sm:$0xff]   ;;  %v2535_v10 = vld [vmem:[#allocation8 + $0x40] ss:$8 sps:$4 sm:$0xff]  }
  0x6b   : > { %v2536_v11 = vld [vmem:[#allocation8 + $0x34] ss:$8 sps:$4 sm:$0xff]   ;;  %1474 = vmatprep.subr.bf16.mxu1 %v2545_v8  ;;  %v2551_v12 = vld [vmem:[#allocation8 + $0x164] ss:$8 sps:$4 sm:$0xff]   ;;  %v2553_v13 = vld [vmem:[#allocation8 + $0x160] ss:$8 sps:$4 sm:$0xff]  }
  0x6c   : > { %1475 = vmatpush1.bf16.msra.mxu1 %v2547_v9  ;;  %v2538_v14 = vld [vmem:[#allocation8 + $0x30] ss:$8 sps:$4 sm:$0xff]   ;;  %v2557_v15 = vld [vmem:[#allocation8 + $0x154] ss:$8 sps:$4 sm:$0xff]   ;;  %v2539_v16 = vld [vmem:[#allocation8 + $0x24] ss:$8 sps:$4 sm:$0xff]  }
  0x6d   : > { %1284 = vmatpush1.bf16.msra.mxu0 %v2529_v4  ;;  %1476 = vmatprep.subr.bf16.mxu1 %v2551_v12  ;;  %v2559_v17 = vld [vmem:[#allocation8 + $0x150] ss:$8 sps:$4 sm:$0xff]   ;;  %v2563_v18 = vld [vmem:[#allocation8 + $0x144] ss:$8 sps:$4 sm:$0xff]   ;;  %v2541_v19 = vld [vmem:[#allocation8 + $0x20] ss:$8 sps:$4 sm:$0xff]  }
  0x6e   : > { %1285 = vmatprep.subr.bf16.mxu0 %v2530_v5  ;;  %v2542_v20 = vld [vmem:[#allocation8 + $0x14] ss:$8 sps:$4 sm:$0xff]   ;;  %v2565_v22 = vld [vmem:[#allocation8 + $0x140] ss:$8 sps:$4 sm:$0xff]   ;;  %v2544_v24 = vld [vmem:[#allocation8 + $0x10] ss:$8 sps:$4 sm:$0xff]  }
  0x6f   : > { %v2569_v23 = vld [vmem:[#allocation8 + $0x134] ss:$8 sps:$4 sm:$0xff]   ;;  %v2548_v25 = vld [vmem:[#allocation8 + $0x4] ss:$8 sps:$4 sm:$0xff]   ;;  %v3045_v26 = vshrl.u32 %v430_v21, 7  ;;  %s2214_s29 = sshll.u32 %s3025_s18, 9 }
  0x70   : > { %1477 = vmatpush1.bf16.msra.mxu1 %v2553_v13  ;;  %v2571_v27 = vld [vmem:[#allocation8 + $0x130] ss:$8 sps:$4 sm:$0xff]   ;;  %v2575_v28 = vld [vmem:[#allocation8 + $0x124] ss:$8 sps:$4 sm:$0xff]   ;;  %v2550_v29 = vld [vmem:[#allocation8] ss:$8 sps:$4 sm:$0xff]  }
  0x71   : > { %1286 = vmatpush1.bf16.msra.mxu0 %v2532_v6  ;;  %1478 = vmatprep.subr.bf16.mxu1 %v2557_v15  ;;  %v2554_v30 = vld [vmem:[#allocation8 + $0xf4] ss:$8 sps:$4 sm:$0xff]   ;;  %v440_v31 = vsub.s32 2, %v3045_v26  ;;  %v436_v32 = vsub.s32 1, %v3045_v26  ;;  %v2577_v33 = vld [vmem:[#allocation8 + $0x120] ss:$8 sps:$4 sm:$0xff]   ;;  %v785_v48 = vadd.s32 %v3052_v38, %v3045_v26 }
  0x72   : > { %1287 = vmatprep.subr.bf16.mxu0 %v2533_v7  ;;  %v2556_v34 = vld [vmem:[#allocation8 + $0xf0] ss:$8 sps:$4 sm:$0xff]   ;;  %v2581_v35 = vld [vmem:[#allocation8 + $0x114] ss:$8 sps:$4 sm:$0xff]   ;;  %v334_v36 = vld [vmem:[%s3029_s10 + $0x10] sm:$0xff]  ;;  %v752_v37 = vadd.s32 8, %v3045_v26 }
  0x73   : > { %v337_v39 = vld [vmem:[%s3029_s10 + $0x28] sm:$0xff]  ;;  %v3055_v40 = vld [vmem:[#allocation5] sm:$0x7]  ;;  %v3057_v41 = vld [vmem:[#allocation7] sm:$0x7]  ;;  %v753_v60 = vadd.s32 16, %v3045_v26 }
  0x74   : > { %1479 = vmatpush1.bf16.msra.mxu1 %v2559_v17  ;;  %v2560_v42 = vld [vmem:[#allocation8 + $0xe4] ss:$8 sps:$4 sm:$0xff]   ;;  %v3060_v43 = vrot.slane %v3055_v40, %v440_v31  ;;  %v3063_v44 = vrot.slane %v3057_v41, %v440_v31  ;;  %v3066_v45 = vrot.slane %v3055_v40, %v436_v32  ;;  %v3069_v46 = vrot.slane %v3057_v41, %v436_v32  ;;  %v2583_v47 = vld [vmem:[#allocation8 + $0x110] ss:$8 sps:$4 sm:$0xff]   ;;  %v2562_v56 = vld [vmem:[#allocation8 + $0xe0] ss:$8 sps:$4 sm:$0xff]  }
  0x75   : > { %1288 = vmatpush1.bf16.msra.mxu0 %v2535_v10  ;;  %1480 = vmatprep.subr.bf16.mxu1 %v2563_v18  ;;  %v333_v49 = vld [vmem:[%s3029_s10 + $0x8] sm:$0xff]  ;;  %v786_v53 = vadd.s32 %v3052_v38, %v752_v37  ;;  %v336_v54 = vld [vmem:[%s3029_s10 + $0x20] sm:$0xff]  ;;  %v343_v59 = vld [vmem:[%s3029_s10 + $0x58] sm:$0xff]  ;;  %vm817_vm0 = vcmp.lt.s32.totalorder %v785_v48, 1000  ;;  %v754_v6 = vadd.s32 24, %v3045_v26  ;;  %v755_v31 = vadd.s32 32, %v3045_v26 }
  0x76   : > { %1289 = vmatprep.subr.bf16.mxu0 %v2536_v11  ;;  %v2587_v50 = vld [vmem:[#allocation8 + $0x104] ss:$8 sps:$4 sm:$0xff]   ;;  %v447_v51 = vmul.f32 %v3060_v43, %v334_v36  ;;  %v450_v52 = vmul.f32 %v3060_v43, %v337_v39  ;;  %v446_v55 = vmul.f32 %v3066_v45, %v333_v49  ;;  %v449_v57 = vmul.f32 %v3066_v45, %v336_v54  ;;  %v340_v58 = vld [vmem:[%s3029_s10 + $0x40] sm:$0xff]  ;;  %v2589_v3 = vld [vmem:[#allocation8 + $0x100] ss:$8 sps:$4 sm:$0xff]   ;;  %s3622_s30 = scalar_lea.vmem [#allocation10], %s2214_s29 }
  0x77   : > { %v2566_v61 = vld [vmem:[#allocation8 + $0xd4] ss:$8 sps:$4 sm:$0xff]   ;;  %v453_v2 = vmul.f32 %v3060_v43, %v340_v58  ;;  %v456_v5 = vmul.f32 %v3060_v43, %v343_v59  ;;  %vm818_vm1 = vcmp.lt.s32.totalorder %v786_v53, 1000  ;;  %v2568_v10 = vld [vmem:[#allocation8 + $0xd0] ss:$8 sps:$4 sm:$0xff]   ;;  %v346_v18 = vld [vmem:[%s3029_s10 + $0x70] sm:$0xff] }
  0x78   : > { %1481 = vmatpush1.bf16.msra.mxu1 %v2565_v22  ;;  %v560_v62 = vadd.f32 %v3063_v44, %v447_v51  ;;  %v563_v63 = vadd.f32 %v3063_v44, %v450_v52  ;;  %v559_v1 = vadd.f32 %v3069_v46, %v446_v55  ;;  %v562_v4 = vadd.f32 %v3069_v46, %v449_v57  ;;  %v2572_v12 = vld [vmem:[#allocation8 + $0xc4] ss:$8 sps:$4 sm:$0xff]   ;;  %vm3093_vm2 = vmpackc.low %vm818_vm1, %vm817_vm0  ;;  %v335_v36 = vld [vmem:[%s3029_s10 + $0x18] sm:$0xff]  ;;  %s2423_s7 = sshll.u32 %s2903_s25, 13  ;;  %s2010_s9 = sshll.u32 %s3622_s30, 4  ;;  %s4069_s9 = int_to_ptr.vmem [resolvable:$true] %s2010_s9 }
  0x79   : > { %1290 = vmatpush1.bf16.msra.mxu0 %v2538_v14  ;;  %1482 = vmatprep.subr.bf16.mxu1 %v2569_v23  ;;  %v566_v14 = vadd.f32 %v3063_v44, %v453_v2  ;;  %v569_v15 = vadd.f32 %v3063_v44, %v456_v5  ;;  %v787_v22 = vadd.s32 %v3052_v38, %v753_v60  ;;  %v2584_v37 = vld [vmem:[#allocation8 + $0xa4] ss:$8 sps:$4 sm:$0xff]   ;;  %v352_v51 = vld [vmem:[%s3029_s10 + $0xa0] sm:$0xff]  ;;  %v355_v52 = vld [vmem:[%s3029_s10 + $0xb8] sm:$0xff]  ;;  %v758_v2 = vadd.s32 56, %v3045_v26  ;;  %s4067_s8 = scalar_lea.hbm %s4194_s4, %s2423_s7  ;;  %s1986_s15 = scalar_lea.sflag [#allocation4], %s3025_s18 }
  0x7a   : > { %1291 = vmatprep.subr.bf16.mxu0 %v2539_v16  ;;  %v656_v7 = vmax.f32 %v560_v62, 0.0  ;;  %v659_v8 = vmax.f32 %v563_v63, 0.0  ;;  %v655_v9 = vmax.f32 %v559_v1, 0.0  ;;  %v658_v11 = vmax.f32 %v562_v4, 0.0  ;;  %v2586_v57 = vld [vmem:[#allocation8 + $0xa0] ss:$8 sps:$4 sm:$0xff]  }
  0x7b   : > { %v788_v23 = vadd.s32 %v3052_v38, %v754_v6  ;;  %vm819_vm3 = vcmp.lt.s32.totalorder %v787_v22, 1000  ;;  %v2590_v60 = vld [vmem:[#allocation8 + $0x94] ss:$8 sps:$4 sm:$0xff]   ;;  %v468_v63 = vmul.f32 %v3060_v43, %v355_v52  ;;  %v757_v1 = vadd.s32 48, %v3045_v26  ;;  %v2592_v5 = vld [vmem:[#allocation8 + $0x90] ss:$8 sps:$4 sm:$0xff]  }
  0x7c   : > { %1483 = vmatpush1.bf16.msra.mxu1 %v2571_v27  ;;  %v2363_v13 = vpack.c.bf16 %v659_v8, %v656_v7  ;;  %v2267_v17 = vpack.c.bf16 %v658_v11, %v655_v9  ;;  %v662_v27 = vmax.f32 %v566_v14, 0.0  ;;  %v338_v8 = vld [vmem:[%s3029_s10 + $0x30] sm:$0xff]  ;;  %v341_v9 = vld [vmem:[%s3029_s10 + $0x48] sm:$0xff]  ;;  %s2702_s26 = scalar_lea.vmem %s4069_s9, 8192  ;;  %p4247_p9 = scmp.ne.s32.totalorder %s4207_s17, 0 }
  0x7d   : > { %1292 = vmatpush1.bf16.msra.mxu0 %v2541_v19  ;;  %1484 = vmatprep.subr.bf16.mxu1 %v2575_v28  ;;  %v349_v19 = vld [vmem:[%s3029_s10 + $0x88] sm:$0xff]  ;;  %v665_v28 = vmax.f32 %v569_v15, 0.0  ;;  %vm820_vm4 = vcmp.lt.s32.totalorder %v788_v23, 1000  ;;  %v581_v15 = vadd.f32 %v3063_v44, %v468_v63  ;;  %v364_v63 = vld [vmem:[%s3029_s10 + $0x100] sm:$0xff]  ;;  %p2703_p11 = scmp.ne.s32.totalorder %s4069_s9, %s2702_s26  ;;  %s2841_s14 = smov [#allocation10]  }
  0x7e   : > { %1293 = vmatprep.subr.bf16.mxu0 %v2542_v20  ;;  %v432_v20 = vsub.s32 0, %v3045_v26  ;;  %2268 = vmatprep.mubr.msk.bf16.mxu0 %vm3093_vm2, %v2267_v17  ;;  %vm3120_vm5 = vmpackc.low %vm820_vm4, %vm819_vm3  ;;  %v361_v22 = vld [vmem:[%s3029_s10 + $0xe8] sm:$0xff]  ;;  %s2706_s19 = sshll.u32 %s2841_s14, 4  ;;  %s2707_s19 = int_to_ptr.vmem [resolvable:$false] %s2706_s19 }
  0x7f   : > { %v2366_v39 = vpack.c.bf16 %v665_v28, %v662_v27  ;;  %v2595_v28 = vld [vmem:[#allocation8 + $0x80] ss:$8 sps:$4 sm:$0xff]   ;;  %p2704_p12 = pnand %p2703_p11, %p4247_p9  ;;  %s2708_s20 = scalar_lea.vmem %s2707_s19, 16384 }
  0x80   : > { %1485 = vmatpush1.bf16.msra.mxu1 %v2577_v33  ;;  %v3111_v32 = vrot.slane %v3055_v40, %v432_v20  ;;  %v756_v33 = vadd.s32 40, %v3045_v26  ;;  %v3130_v55 = vrot.slane %v3057_v41, %v432_v20  ;;  %v465_v41 = vmul.f32 %v3060_v43, %v352_v51  ;;  %v358_v20 = vld [vmem:[%s3029_s10 + $0xd0] sm:$0xff]  ;;  %p2709_p3 = scmp.lt.s32.totalorder %s4069_s9, %s2707_s19  ;;  %p2710_p0 = scmp.lt.s32.totalorder %s2708_s20, %s2702_s26 }
  0x81   : > { %1294 = vmatpush1.bf16.msra.mxu0 %v2544_v24  ;;  %1486 = vmatprep.subr.bf16.mxu1 %v2581_v35  ;;  %v2574_v24 = vld [vmem:[#allocation8 + $0xc0] ss:$8 sps:$4 sm:$0xff]   ;;  %v332_v35 = vld [vmem:[%s3029_s10] sm:$0xff]  ;;  %p2705_p13 = pneg %p2704_p12 }
  0x82   : > { %1295 = vmatprep.subr.bf16.mxu0 %v2548_v25  ;;  %v2578_v25 = vld [vmem:[#allocation8 + $0xb4] ss:$8 sps:$4 sm:$0xff]   ;;  %v445_v53 = vmul.f32 %v3111_v32, %v332_v35  ;;  %v448_v54 = vmul.f32 %v3111_v32, %v335_v36  ;;  %v578_v14 = vadd.f32 %v3063_v44, %v465_v41  ;;  %v454_v27 = vmul.f32 %v3111_v32, %v341_v9  ;;  %p2711_p2 = por %p2710_p0, %p2709_p3 }
  0x83   : > { %v677_v35 = vmax.f32 %v581_v15, 0.0  ;;  %v471_v36 = vmul.f32 %v3060_v43, %v358_v20 }
  0x84   : > { %1487 = vmatpush1.bf16.msra.mxu1 %v2583_v47  ;;  %v342_v47 = vld [vmem:[%s3029_s10 + $0x50] sm:$0xff]  ;;  %v561_v4 = vadd.f32 %v3130_v55, %v448_v54  ;;  %v347_v54 = vld [vmem:[%s3029_s10 + $0x78] sm:$0xff]  ;;  %p2712_p4 = pnand %p2711_p2, %p2705_p13 }
  0x85   : > { %1296 = vmatpush1.bf16.msra.mxu0 %v2550_v29  ;;  %1488 = vmatprep.subr.bf16.mxu1 %v2587_v50  ;;  %v459_v29 = vmul.f32 %v3060_v43, %v346_v18  ;;  %v789_v50 = vadd.s32 %v3052_v38, %v755_v31  ;;  %v455_v59 = vmul.f32 %v3066_v45, %v342_v47 }
  0x86   : > { %1297 = vmatprep.subr.bf16.mxu0 %v2554_v30  ;;  %v462_v30 = vmul.f32 %v3060_v43, %v349_v19  ;;  %v791_v18 = vadd.s32 %v3052_v38, %v757_v1  ;;  %v792_v19 = vadd.s32 %v3052_v38, %v758_v2  ;;  %v367_v1 = vld [vmem:[%s3029_s10 + $0x118] sm:$0xff] }
  0x87   : > { %v572_v48 = vadd.f32 %v3063_v44, %v459_v29  ;;  %vm821_vm6 = vcmp.lt.s32.totalorder %v789_v50, 1000  ;;  %v568_v7 = vadd.f32 %v3069_v46, %v455_v59  ;;  %v584_v59 = vadd.f32 %v3063_v44, %v471_v36  ;;  %v370_v36 = vld [vmem:[%s3029_s10 + $0x130] sm:$0xff] }
  0x88   : > { %1489 = vmatpush1.bf16.msra.mxu1 %v2589_v3  ;;  %v575_v40 = vadd.f32 %v3063_v44, %v462_v30  ;;  %v558_v3 = vadd.f32 %v3130_v55, %v445_v53  ;;  %vm823_vm9 = vcmp.lt.s32.totalorder %v791_v18, 1000  ;;  %vm824_vm10 = vcmp.lt.s32.totalorder %v792_v19, 1000  ;;  %v344_v53 = vld [vmem:[%s3029_s10 + $0x60] sm:$0xff] }
  0x89   : > { %1298 = vmatpush2.bf16.msra.mxu0 %v2556_v34  ;;  %v2580_v34 = vld [vmem:[#allocation8 + $0xb0] ss:$8 sps:$4 sm:$0xff]   ;;  %v664_v30 = vmax.f32 %v568_v7, 0.0  ;;  %vm3183_vm11 = vmpackc.low %vm824_vm10, %vm823_vm9  ;;  %v680_v16 = vmax.f32 %v584_v59, 0.0 }
  0x8a   : > { %1299 = vmatprep.subr.bf16.mxu0 %v2560_v42  ;;  %v339_v42 = vld [vmem:[%s3029_s10 + $0x38] sm:$0xff]  ;;  %v671_v62 = vmax.f32 %v575_v40, 0.0  ;;  %v654_v23 = vmax.f32 %v558_v3, 0.0  ;;  %v567_v40 = vadd.f32 %v3130_v55, %v454_v27 }
  0x8b   : > { %2364 = vmatmul.mubr.msk.bf16.vlgmr.msra.gmra.mxu1 %vm3093_vm2, %v2363_v13  ;;  %v452_v58 = vmul.f32 %v3066_v45, %v339_v42  ;;  %v348_v13 = vld [vmem:[%s3029_s10 + $0x80] sm:$0xff]  ;;  %v760_v42 = vadd.s32 72, %v3045_v26 }
  0x8c   : > { %1516 = vmatprep.mubr.bf16.mxu1 %v2840_v0  ;;  %v663_v3 = vmax.f32 %v567_v40, 0.0 }
  0x8d   : > { %1300 = vmatpush2.bf16.msra.mxu0 %v2562_v56  ;;  %v790_v56 = vadd.s32 %v3052_v38, %v756_v33  ;;  %v565_v6 = vadd.f32 %v3069_v46, %v452_v58  ;;  %v461_v33 = vmul.f32 %v3066_v45, %v348_v13  ;;  %v354_v58 = vld [vmem:[%s3029_s10 + $0xb0] sm:$0xff]  ;;  %v794_v41 = vadd.s32 %v3052_v38, %v760_v42 }
  0x8e   : > { %1301 = vmatprep.subr.bf16.mxu0 %v2566_v61  ;;  %v668_v61 = vmax.f32 %v572_v48, 0.0  ;;  %v467_v9 = vmul.f32 %v3066_v45, %v354_v58  ;;  %v761_v13 = vadd.s32 80, %v3045_v26  ;;  %v764_v58 = vadd.s32 104, %v3045_v26 }
  0x8f   : > { %vm822_vm7 = vcmp.lt.s32.totalorder %v790_v56, 1000  ;;  %v661_v29 = vmax.f32 %v565_v6, 0.0  ;;  %v574_v52 = vadd.f32 %v3069_v46, %v461_v33  ;;  %vm826_vm13 = vcmp.lt.s32.totalorder %v794_v41, 1000 }
  0x90   : > { %v2369_v11 = vpack.c.bf16 %v671_v62, %v668_v61  ;;  %vm3153_vm8 = vmpackc.low %vm822_vm7, %vm821_vm6 }
  0x91   : > { %1302 = vmatpush2.bf16.msra.mxu0 %v2568_v10  ;;  %v2593_v10 = vld [vmem:[#allocation8 + $0x84] ss:$8 sps:$4 sm:$0xff]   ;;  %v2273_v50 = vpack.c.bf16 %v664_v30, %v661_v29  ;;  %v670_v7 = vmax.f32 %v574_v52, 0.0  ;;  %v360_v29 = vld [vmem:[%s3029_s10 + $0xe0] sm:$0xff] }
  0x92   : > { %1303 = vmatprep.subr.bf16.mxu0 %v2572_v12  ;;  %v345_v12 = vld [vmem:[%s3029_s10 + $0x68] sm:$0xff]  ;;  %v473_v52 = vmul.f32 %v3066_v45, %v360_v29  ;;  %v766_v29 = vadd.s32 120, %v3045_v26 }
  0x93   : > { %2367 = vmatmul.mubr.msk.bf16.gmra.mxu1 %vm3120_vm5, %v2366_v39  ;;  %v458_v31 = vmul.f32 %v3066_v45, %v345_v12  ;;  %v759_v39 = vadd.s32 64, %v3045_v26  ;;  %v480_v12 = vmul.f32 %v3060_v43, %v367_v1 }
  0x94   : > { %1526 = vmatprep.mubr.bf16.mxu1 %v2840_v0  ;;  %v586_v1 = vadd.f32 %v3069_v46, %v473_v52 }
  0x95   : > { %1304 = vmatpush2.bf16.msra.mxu0 %v2574_v24  ;;  %v657_v24 = vmax.f32 %v561_v4, 0.0  ;;  %v571_v51 = vadd.f32 %v3069_v46, %v458_v31  ;;  %v793_v62 = vadd.s32 %v3052_v38, %v759_v39  ;;  %v457_v4 = vmul.f32 %v3111_v32, %v344_v53 }
  0x96   : > { %1305 = vmatprep.subr.bf16.mxu0 %v2578_v25  ;;  %v451_v25 = vmul.f32 %v3111_v32, %v338_v8  ;;  %v593_v31 = vadd.f32 %v3063_v44, %v480_v12  ;;  %v379_v12 = vld [vmem:[%s3029_s10 + $0x178] sm:$0xff] }
  0x97   : > { %v2270_v47 = vpack.c.bf16 %v657_v24, %v654_v23  ;;  %v667_v6 = vmax.f32 %v571_v51, 0.0  ;;  %vm825_vm12 = vcmp.lt.s32.totalorder %v793_v62, 1000  ;;  %v570_v18 = vadd.f32 %v3130_v55, %v457_v4  ;;  %v350_v24 = vld [vmem:[%s3029_s10 + $0x90] sm:$0xff] }
  0x98   : > { %v564_v48 = vadd.f32 %v3130_v55, %v451_v25  ;;  %v580_v23 = vadd.f32 %v3069_v46, %v467_v9  ;;  %v353_v25 = vld [vmem:[%s3029_s10 + $0xa8] sm:$0xff]  ;;  %vm3217_vm14 = vmpackc.low %vm826_vm13, %vm825_vm12  ;;  %v689_v53 = vmax.f32 %v593_v31, 0.0 }
  0x99   : > { %1306 = vmatpush2.bf16.msra.mxu0 %v2580_v34  ;;  %v674_v34 = vmax.f32 %v578_v14, 0.0  ;;  %v762_v14 = vadd.s32 88, %v3045_v26  ;;  %v2279_v20 = vpack.c.bf16 %v670_v7, %v667_v6  ;;  %v666_v39 = vmax.f32 %v570_v18, 0.0  ;;  %v366_v6 = vld [vmem:[%s3029_s10 + $0x110] sm:$0xff] }
  0x9a   : > { %1307 = vmatprep.subr.bf16.mxu0 %v2584_v37  ;;  %v474_v37 = vmul.f32 %v3060_v43, %v361_v22  ;;  %v660_v2 = vmax.f32 %v564_v48, 0.0  ;;  %v466_v48 = vmul.f32 %v3111_v32, %v353_v25 }
  0x9b   : > { %2370 = vmatmul.mubr.msk.bf16.gmra.mxu1 %vm3153_vm8, %v2369_v11  ;;  %v2372_v56 = vpack.c.bf16 %v677_v35, %v674_v34  ;;  %v477_v11 = vmul.f32 %v3060_v43, %v364_v63  ;;  %v795_v34 = vadd.s32 %v3052_v38, %v761_v13  ;;  %v796_v35 = vadd.s32 %v3052_v38, %v762_v14 }
  0x9c   : > { %1536 = vmatprep.mubr.bf16.mxu1 %v2840_v0  ;;  %v2276_v15 = vpack.c.bf16 %v663_v3, %v660_v2  ;;  %v579_v62 = vadd.f32 %v3130_v55, %v466_v48  ;;  %v356_v2 = vld [vmem:[%s3029_s10 + $0xc0] sm:$0xff]  ;;  %v359_v3 = vld [vmem:[%s3029_s10 + $0xd8] sm:$0xff]  ;;  %v369_v48 = vld [vmem:[%s3029_s10 + $0x128] sm:$0xff] }
  0x9d   : > { %1308 = vmatpush2.bf16.msra.mxu0 %v2586_v57  ;;  %v351_v57 = vld [vmem:[%s3029_s10 + $0x98] sm:$0xff]  ;;  %v590_v30 = vadd.f32 %v3063_v44, %v477_v11  ;;  %vm827_vm15 = vcmp.lt.s32.totalorder %v795_v34, 1000  ;;  %vm828_vm0 = vcmp.lt.s32.totalorder %v796_v35, 1000  ;;  %v376_v11 = vld [vmem:[%s3029_s10 + $0x160] sm:$0xff]  ;;  %v472_v18 = vmul.f32 %v3111_v32, %v359_v3 }
  0x9e   : > { %1309 = vmatprep.subr.bf16.mxu0 %v2590_v60  ;;  %v587_v60 = vadd.f32 %v3063_v44, %v474_v37  ;;  %v464_v8 = vmul.f32 %v3066_v45, %v351_v57  ;;  %v373_v37 = vld [vmem:[%s3029_s10 + $0x148] sm:$0xff]  ;;  %v763_v57 = vadd.s32 96, %v3045_v26  ;;  %vm3251_vm1 = vmpackc.low %vm828_vm0, %vm827_vm15  ;;  %v675_v14 = vmax.f32 %v579_v62, 0.0 }
  0x9f   : > { %v686_v49 = vmax.f32 %v590_v30, 0.0  ;;  %v489_v25 = vmul.f32 %v3060_v43, %v376_v11  ;;  %v585_v34 = vadd.f32 %v3130_v55, %v472_v18  ;;  %v375_v18 = vld [vmem:[%s3029_s10 + $0x158] sm:$0xff] }
  0xa0   : > { %v577_v22 = vadd.f32 %v3069_v46, %v464_v8 }
  0xa1   : > { %1310 = vmatpush2.bf16.msra.mxu0 %v2592_v5  ;;  %v460_v5 = vmul.f32 %v3111_v32, %v347_v54  ;;  %v483_v54 = vmul.f32 %v3060_v43, %v370_v36  ;;  %v2378_v4 = vpack.c.bf16 %v689_v53, %v686_v49  ;;  %v800_v53 = vadd.s32 %v3052_v38, %v766_v29 }
  0xa2   : > { %1311 = vmatprep.subr.bf16.mxu0 %v2593_v10  ;;  %v683_v10 = vmax.f32 %v587_v60, 0.0  ;;  %v673_v40 = vmax.f32 %v577_v22, 0.0 }
  0xa3   : > { %2373 = vmatmul.mubr.msk.bf16.gmra.mxu1 %vm3183_vm11, %v2372_v56  ;;  %v573_v19 = vadd.f32 %v3130_v55, %v460_v5  ;;  %v486_v56 = vmul.f32 %v3060_v43, %v373_v37  ;;  %v363_v5 = vld [vmem:[%s3029_s10 + $0xf8] sm:$0xff]  ;;  %v596_v7 = vadd.f32 %v3063_v44, %v483_v54  ;;  %v382_v54 = vld [vmem:[%s3029_s10 + $0x190] sm:$0xff]  ;;  %vm832_vm6 = vcmp.lt.s32.totalorder %v800_v53, 1000 }
  0xa4   : > { %1546 = vmatprep.mubr.bf16.mxu1 %v2840_v0  ;;  %v2375_v27 = vpack.c.bf16 %v683_v10, %v680_v16  ;;  %v797_v16 = vadd.s32 %v3052_v38, %v763_v57  ;;  %v798_v10 = vadd.s32 %v3052_v38, %v764_v58  ;;  %v476_v22 = vmul.f32 %v3066_v45, %v363_v5 }
  0xa5   : > { %1312 = vmatpush2.bf16.msra.mxu0 %v2595_v28  ;;  %v357_v28 = vld [vmem:[%s3029_s10 + $0xc8] sm:$0xff]  ;;  %v669_v42 = vmax.f32 %v573_v19, 0.0  ;;  %v599_v8 = vadd.f32 %v3063_v44, %v486_v56  ;;  %v692_v17 = vmax.f32 %v596_v7, 0.0  ;;  %v681_v58 = vmax.f32 %v585_v34, 0.0 }
  0xa6   : > { %v470_v51 = vmul.f32 %v3066_v45, %v357_v28  ;;  %v765_v28 = vadd.s32 112, %v3045_v26  ;;  %vm830_vm3 = vcmp.lt.s32.totalorder %v798_v10, 1000  ;;  %v589_v36 = vadd.f32 %v3069_v46, %v476_v22  ;;  %v385_v56 = vld [vmem:[%s3029_s10 + $0x1a8] sm:$0xff] }
  0xa7   : > { %v2282_v59 = vpack.c.bf16 %v669_v42, %v666_v39  ;;  %v362_v39 = vld [vmem:[%s3029_s10 + $0xf0] sm:$0xff]  ;;  %v365_v42 = vld [vmem:[%s3029_s10 + $0x108] sm:$0xff]  ;;  %v495_v3 = vmul.f32 %v3060_v43, %v382_v54  ;;  %v767_v5 = vadd.s32 128, %v3045_v26 }
  0xa8   : > { %2271 = vmatmul.mubr.msk.bf16.vlgmr.msra.gmra.mxu0 %vm3093_vm2, %v2270_v47  ;;  %v463_v47 = vmul.f32 %v3111_v32, %v350_v24  ;;  %v583_v63 = vadd.f32 %v3069_v46, %v470_v51  ;;  %v695_v24 = vmax.f32 %v599_v8, 0.0  ;;  %vm829_vm2 = vcmp.lt.s32.totalorder %v797_v16, 1000 }
  0xa9   : > { %2274 = vmatprep.mubr.msk.bf16.mxu0 %vm3120_vm5, %v2273_v50  ;;  %v676_v50 = vmax.f32 %v580_v23, 0.0  ;;  %v479_v23 = vmul.f32 %v3066_v45, %v366_v6  ;;  %vm3285_vm4 = vmpackc.low %vm830_vm3, %vm829_vm2  ;;  %v799_v49 = vadd.s32 %v3052_v38, %v765_v28  ;;  %v685_v62 = vmax.f32 %v589_v36, 0.0 }
  0xaa   : > { %v576_v60 = vadd.f32 %v3130_v55, %v463_v47  ;;  %v679_v19 = vmax.f32 %v583_v63, 0.0  ;;  %v2381_v47 = vpack.c.bf16 %v695_v24, %v692_v17  ;;  %v482_v63 = vmul.f32 %v3066_v45, %v369_v48 }
  0xab   : > { %2376 = vmatmul.mubr.msk.bf16.gmra.mxu1 %vm3217_vm14, %v2375_v27  ;;  %v2285_v41 = vpack.c.bf16 %v676_v50, %v673_v40  ;;  %v492_v27 = vmul.f32 %v3060_v43, %v379_v12  ;;  %v592_v37 = vadd.f32 %v3069_v46, %v479_v23  ;;  %v372_v40 = vld [vmem:[%s3029_s10 + $0x140] sm:$0xff]  ;;  %v602_v50 = vadd.f32 %v3063_v44, %v489_v25 }
  0xac   : > { %1556 = vmatprep.mubr.bf16.mxu1 %v2840_v0  ;;  %v672_v13 = vmax.f32 %v576_v60, 0.0  ;;  %v478_v60 = vmul.f32 %v3111_v32, %v365_v42  ;;  %v768_v6 = vadd.s32 136, %v3045_v26  ;;  %v595_v11 = vadd.f32 %v3069_v46, %v482_v63  ;;  %v388_v25 = vld [vmem:[%s3029_s10 + $0x1c0] sm:$0xff] }
  0xad   : > { %v605_v51 = vadd.f32 %v3063_v44, %v492_v27  ;;  %v698_v61 = vmax.f32 %v602_v50, 0.0  ;;  %v801_v17 = vadd.s32 %v3052_v38, %v767_v5  ;;  %v391_v27 = vld [vmem:[%s3029_s10 + $0x1d8] sm:$0xff]  ;;  %v488_v36 = vmul.f32 %v3066_v45, %v375_v18 }
  0xae   : > { %v2288_v30 = vpack.c.bf16 %v675_v14, %v672_v13  ;;  %v591_v16 = vadd.f32 %v3130_v55, %v478_v60  ;;  %v368_v13 = vld [vmem:[%s3029_s10 + $0x120] sm:$0xff]  ;;  %v371_v14 = vld [vmem:[%s3029_s10 + $0x138] sm:$0xff]  ;;  %v802_v24 = vadd.s32 %v3052_v38, %v768_v6  ;;  %v691_v34 = vmax.f32 %v595_v11, 0.0  ;;  %v381_v60 = vld [vmem:[%s3029_s10 + $0x188] sm:$0xff] }
  0xaf   : > { %v501_v42 = vmul.f32 %v3060_v43, %v388_v25  ;;  %v769_v48 = vadd.s32 144, %v3045_v26  ;;  %v601_v54 = vadd.f32 %v3069_v46, %v488_v36  ;;  %v494_v11 = vmul.f32 %v3066_v45, %v381_v60 }
  0xb0   : > { %2277 = vmatmul.mubr.msk.bf16.gmra.mxu0 %vm3120_vm5, %v2276_v15  ;;  %v469_v15 = vmul.f32 %v3111_v32, %v356_v2  ;;  %v701_v2 = vmax.f32 %v605_v51, 0.0  ;;  %vm831_vm5 = vcmp.lt.s32.totalorder %v799_v49, 1000  ;;  %v687_v29 = vmax.f32 %v591_v16, 0.0 }
  0xb1   : > { %2280 = vmatprep.mubr.msk.bf16.mxu0 %vm3153_vm8, %v2279_v20  ;;  %v682_v20 = vmax.f32 %v586_v1, 0.0  ;;  %v485_v1 = vmul.f32 %v3066_v45, %v372_v40  ;;  %vm3319_vm7 = vmpackc.low %vm832_vm6, %vm831_vm5  ;;  %v770_v40 = vadd.s32 152, %v3045_v26  ;;  %vm834_vm9 = vcmp.lt.s32.totalorder %v802_v24, 1000 }
  0xb2   : > { %v582_v31 = vadd.f32 %v3130_v55, %v469_v15  ;;  %v2384_v15 = vpack.c.bf16 %v701_v2, %v698_v61  ;;  %v803_v61 = vadd.s32 %v3052_v38, %v769_v48  ;;  %v697_v16 = vmax.f32 %v601_v54, 0.0 }
  0xb3   : > { %2379 = vmatmul.mubr.msk.bf16.gmra.mxu1 %vm3251_vm1, %v2378_v4  ;;  %v2291_v35 = vpack.c.bf16 %v682_v20, %v679_v19  ;;  %v498_v4 = vmul.f32 %v3060_v43, %v385_v56  ;;  %v598_v12 = vadd.f32 %v3069_v46, %v485_v1  ;;  %v378_v19 = vld [vmem:[%s3029_s10 + $0x170] sm:$0xff]  ;;  %v608_v20 = vadd.f32 %v3063_v44, %v495_v3 }
  0xb4   : > { %1566 = vmatprep.mubr.bf16.mxu1 %v2840_v0  ;;  %v678_v57 = vmax.f32 %v582_v31, 0.0  ;;  %v484_v31 = vmul.f32 %v3111_v32, %v371_v14  ;;  %v804_v2 = vadd.s32 %v3052_v38, %v770_v40  ;;  %v394_v3 = vld [vmem:[%s3029_s10 + $0x1f0] sm:$0xff]  ;;  %v771_v18 = vadd.s32 160, %v3045_v26 }
  0xb5   : > { %v611_v22 = vadd.f32 %v3063_v44, %v498_v4  ;;  %v704_v33 = vmax.f32 %v608_v20, 0.0  ;;  %v397_v4 = vld [vmem:[%s3029_s10 + $0x208] sm:$0xff]  ;;  %v507_v14 = vmul.f32 %v3060_v43, %v394_v3  ;;  %v607_v25 = vadd.f32 %v3069_v46, %v494_v11 }
  0xb6   : > { %v2294_v7 = vpack.c.bf16 %v681_v58, %v678_v57  ;;  %v597_v49 = vadd.f32 %v3130_v55, %v484_v31  ;;  %v374_v57 = vld [vmem:[%s3029_s10 + $0x150] sm:$0xff]  ;;  %v377_v58 = vld [vmem:[%s3029_s10 + $0x168] sm:$0xff]  ;;  %vm836_vm12 = vcmp.lt.s32.totalorder %v804_v2, 1000  ;;  %v387_v31 = vld [vmem:[%s3029_s10 + $0x1b8] sm:$0xff]  ;;  %v773_v60 = vadd.s32 176, %v3045_v26 }
  0xb7   : > { %v500_v54 = vmul.f32 %v3066_v45, %v387_v31  ;;  %v775_v31 = vadd.s32 192, %v3045_v26 }
  0xb8   : > { %2283 = vmatmul.mubr.msk.bf16.gmra.mxu0 %vm3153_vm8, %v2282_v59  ;;  %v475_v59 = vmul.f32 %v3111_v32, %v362_v39  ;;  %v707_v39 = vmax.f32 %v611_v22, 0.0  ;;  %vm833_vm8 = vcmp.lt.s32.totalorder %v801_v17, 1000  ;;  %v693_v6 = vmax.f32 %v597_v49, 0.0 }
  0xb9   : > { %2286 = vmatprep.mubr.msk.bf16.mxu0 %vm3183_vm11, %v2285_v41  ;;  %v688_v41 = vmax.f32 %v592_v37, 0.0  ;;  %v491_v37 = vmul.f32 %v3066_v45, %v378_v19  ;;  %vm3353_vm10 = vmpackc.low %vm834_vm9, %vm833_vm8  ;;  %v772_v19 = vadd.s32 168, %v3045_v26  ;;  %v703_v49 = vmax.f32 %v607_v25, 0.0 }
  0xba   : > { %v588_v8 = vadd.f32 %v3130_v55, %v475_v59  ;;  %v2387_v59 = vpack.c.bf16 %v707_v39, %v704_v33  ;;  %v805_v33 = vadd.s32 %v3052_v38, %v771_v18  ;;  %v613_v3 = vadd.f32 %v3069_v46, %v500_v54 }
  0xbb   : > { %2382 = vmatmul.mubr.msk.bf16.gmra.mxu1 %vm3285_vm4, %v2381_v47  ;;  %v2297_v10 = vpack.c.bf16 %v688_v41, %v685_v62  ;;  %v504_v47 = vmul.f32 %v3060_v43, %v391_v27  ;;  %v604_v56 = vadd.f32 %v3069_v46, %v491_v37  ;;  %v384_v62 = vld [vmem:[%s3029_s10 + $0x1a0] sm:$0xff]  ;;  %v614_v41 = vadd.f32 %v3063_v44, %v501_v42 }
  0xbc   : > { %1576 = vmatprep.mubr.bf16.mxu1 %v2840_v0  ;;  %v684_v28 = vmax.f32 %v588_v8, 0.0  ;;  %v490_v8 = vmul.f32 %v3111_v32, %v377_v58  ;;  %v806_v39 = vadd.s32 %v3052_v38, %v772_v19  ;;  %v400_v42 = vld [vmem:[%s3029_s10 + $0x220] sm:$0xff] }
  0xbd   : > { %v617_v63 = vadd.f32 %v3063_v44, %v504_v47  ;;  %v710_v9 = vmax.f32 %v614_v41, 0.0  ;;  %v403_v47 = vld [vmem:[%s3029_s10 + $0x238] sm:$0xff]  ;;  %v513_v58 = vmul.f32 %v3060_v43, %v400_v42 }
  0xbe   : > { %v2300_v50 = vpack.c.bf16 %v687_v29, %v684_v28  ;;  %v603_v17 = vadd.f32 %v3130_v55, %v490_v8  ;;  %v380_v28 = vld [vmem:[%s3029_s10 + $0x180] sm:$0xff]  ;;  %v383_v29 = vld [vmem:[%s3029_s10 + $0x198] sm:$0xff]  ;;  %vm838_vm15 = vcmp.lt.s32.totalorder %v806_v39, 1000  ;;  %v393_v8 = vld [vmem:[%s3029_s10 + $0x1e8] sm:$0xff] }
  0xbf   : > { %v506_v25 = vmul.f32 %v3066_v45, %v393_v8  ;;  %v777_v8 = vadd.s32 208, %v3045_v26 }
  0xc0   : > { %2289 = vmatmul.mubr.msk.bf16.gmra.mxu0 %vm3183_vm11, %v2288_v30  ;;  %v481_v30 = vmul.f32 %v3111_v32, %v368_v13  ;;  %v713_v13 = vmax.f32 %v617_v63, 0.0  ;;  %vm835_vm11 = vcmp.lt.s32.totalorder %v803_v61, 1000  ;;  %v699_v40 = vmax.f32 %v603_v17, 0.0 }
  0xc1   : > { %2292 = vmatprep.mubr.msk.bf16.mxu0 %vm3217_vm14, %v2291_v35  ;;  %v694_v35 = vmax.f32 %v598_v12, 0.0  ;;  %v497_v12 = vmul.f32 %v3066_v45, %v384_v62  ;;  %vm3387_vm13 = vmpackc.low %vm836_vm12, %vm835_vm11  ;;  %v774_v62 = vadd.s32 184, %v3045_v26  ;;  %v709_v17 = vmax.f32 %v613_v3, 0.0 }
  0xc2   : > { %v594_v51 = vadd.f32 %v3130_v55, %v481_v30  ;;  %v2390_v30 = vpack.c.bf16 %v713_v13, %v710_v9  ;;  %v807_v9 = vadd.s32 %v3052_v38, %v773_v60  ;;  %v619_v42 = vadd.f32 %v3069_v46, %v506_v25 }
  0xc3   : > { %2385 = vmatmul.mubr.msk.bf16.gmra.mxu1 %vm3319_vm7, %v2384_v15  ;;  %v2303_v53 = vpack.c.bf16 %v694_v35, %v691_v34  ;;  %v510_v15 = vmul.f32 %v3060_v43, %v397_v4  ;;  %v610_v27 = vadd.f32 %v3069_v46, %v497_v12  ;;  %v390_v34 = vld [vmem:[%s3029_s10 + $0x1d0] sm:$0xff]  ;;  %v620_v35 = vadd.f32 %v3063_v44, %v507_v14 }
  0xc4   : > { %1586 = vmatprep.mubr.bf16.mxu1 %v2840_v0  ;;  %v690_v5 = vmax.f32 %v594_v51, 0.0  ;;  %v496_v51 = vmul.f32 %v3111_v32, %v383_v29  ;;  %v808_v13 = vadd.s32 %v3052_v38, %v774_v62  ;;  %v406_v14 = vld [vmem:[%s3029_s10 + $0x250] sm:$0xff] }
  0xc5   : > { %v623_v36 = vadd.f32 %v3063_v44, %v510_v15  ;;  %v716_v52 = vmax.f32 %v620_v35, 0.0  ;;  %v409_v15 = vld [vmem:[%s3029_s10 + $0x268] sm:$0xff]  ;;  %v519_v29 = vmul.f32 %v3060_v43, %v406_v14  ;;  %v778_v14 = vadd.s32 216, %v3045_v26 }
  0xc6   : > { %v2306_v20 = vpack.c.bf16 %v693_v6, %v690_v5  ;;  %v609_v61 = vadd.f32 %v3130_v55, %v496_v51  ;;  %v386_v5 = vld [vmem:[%s3029_s10 + $0x1b0] sm:$0xff]  ;;  %v389_v6 = vld [vmem:[%s3029_s10 + $0x1c8] sm:$0xff]  ;;  %vm840_vm2 = vcmp.lt.s32.totalorder %v808_v13, 1000  ;;  %v399_v51 = vld [vmem:[%s3029_s10 + $0x218] sm:$0xff] }
  0xc7   : > { %v512_v3 = vmul.f32 %v3066_v45, %v399_v51  ;;  %v401_v13 = vld [vmem:[%s3029_s10 + $0x228] sm:$0xff] }
  0xc8   : > { %2295 = vmatmul.mubr.msk.bf16.gmra.mxu0 %vm3217_vm14, %v2294_v7  ;;  %v487_v7 = vmul.f32 %v3111_v32, %v374_v57  ;;  %v719_v57 = vmax.f32 %v623_v36, 0.0  ;;  %vm837_vm14 = vcmp.lt.s32.totalorder %v805_v33, 1000  ;;  %v705_v19 = vmax.f32 %v609_v61, 0.0 }
  0xc9   : > { %2298 = vmatprep.mubr.msk.bf16.mxu0 %vm3251_vm1, %v2297_v10  ;;  %v700_v10 = vmax.f32 %v604_v56, 0.0  ;;  %v503_v56 = vmul.f32 %v3066_v45, %v390_v34  ;;  %vm3421_vm0 = vmpackc.low %vm838_vm15, %vm837_vm14  ;;  %v776_v34 = vadd.s32 200, %v3045_v26  ;;  %v715_v61 = vmax.f32 %v619_v42, 0.0 }
  0xca   : > { %v600_v22 = vadd.f32 %v3130_v55, %v487_v7  ;;  %v2393_v7 = vpack.c.bf16 %v719_v57, %v716_v52  ;;  %v809_v52 = vadd.s32 %v3052_v38, %v775_v31  ;;  %v421_v31 = vld [vmem:[%s3029_s10 + $0x2c8] sm:$0xff] }
  0xcb   : > { %2388 = vmatmul.mubr.msk.bf16.gmra.mxu1 %vm3353_vm10, %v2387_v59  ;;  %v2309_v24 = vpack.c.bf16 %v700_v10, %v697_v16  ;;  %v516_v59 = vmul.f32 %v3060_v43, %v403_v47  ;;  %v616_v4 = vadd.f32 %v3069_v46, %v503_v56  ;;  %v396_v16 = vld [vmem:[%s3029_s10 + $0x200] sm:$0xff]  ;;  %v626_v10 = vadd.f32 %v3063_v44, %v513_v58 }
  0xcc   : > { %1596 = vmatprep.mubr.bf16.mxu1 %v2840_v0  ;;  %v696_v48 = vmax.f32 %v600_v22, 0.0  ;;  %v502_v22 = vmul.f32 %v3111_v32, %v389_v6  ;;  %v810_v57 = vadd.s32 %v3052_v38, %v776_v34  ;;  %v412_v58 = vld [vmem:[%s3029_s10 + $0x280] sm:$0xff] }
  0xcd   : > { %v629_v11 = vadd.f32 %v3063_v44, %v516_v59  ;;  %v722_v23 = vmax.f32 %v626_v10, 0.0  ;;  %v415_v59 = vld [vmem:[%s3029_s10 + $0x298] sm:$0xff]  ;;  %v525_v6 = vmul.f32 %v3060_v43, %v412_v58  ;;  %v780_v58 = vadd.s32 232, %v3045_v26 }
  0xce   : > { %v2312_v41 = vpack.c.bf16 %v699_v40, %v696_v48  ;;  %v615_v33 = vadd.f32 %v3130_v55, %v502_v22  ;;  %v392_v48 = vld [vmem:[%s3029_s10 + $0x1e0] sm:$0xff]  ;;  %v395_v40 = vld [vmem:[%s3029_s10 + $0x1f8] sm:$0xff]  ;;  %vm842_vm5 = vcmp.lt.s32.totalorder %v810_v57, 1000  ;;  %v405_v22 = vld [vmem:[%s3029_s10 + $0x248] sm:$0xff]  ;;  %v779_v57 = vadd.s32 224, %v3045_v26 }
  0xcf   : > { %v518_v42 = vmul.f32 %v3066_v45, %v405_v22 }
  0xd0   : > { %2301 = vmatmul.mubr.msk.bf16.gmra.mxu0 %vm3251_vm1, %v2300_v50  ;;  %v493_v50 = vmul.f32 %v3111_v32, %v380_v28  ;;  %v725_v28 = vmax.f32 %v629_v11, 0.0  ;;  %vm839_vm1 = vcmp.lt.s32.totalorder %v807_v9, 1000  ;;  %v711_v62 = vmax.f32 %v615_v33, 0.0  ;;  %v398_v9 = vld [vmem:[%s3029_s10 + $0x210] sm:$0xff] }
  0xd1   : > { %2304 = vmatprep.mubr.msk.bf16.mxu0 %vm3285_vm4, %v2303_v53  ;;  %v706_v53 = vmax.f32 %v610_v27, 0.0  ;;  %v509_v27 = vmul.f32 %v3066_v45, %v396_v16  ;;  %vm3455_vm3 = vmpackc.low %vm840_vm2, %vm839_vm1 }
  0xd2   : > { %v606_v63 = vadd.f32 %v3130_v55, %v493_v50  ;;  %v2396_v50 = vpack.c.bf16 %v725_v28, %v722_v23  ;;  %v514_v23 = vmul.f32 %v3111_v32, %v401_v13 }
  0xd3   : > { %2391 = vmatmul.mubr.msk.bf16.gmra.mxu1 %vm3387_vm13, %v2390_v30  ;;  %v2315_v2 = vpack.c.bf16 %v706_v53, %v703_v49  ;;  %v522_v30 = vmul.f32 %v3060_v43, %v409_v15  ;;  %v622_v47 = vadd.f32 %v3069_v46, %v509_v27  ;;  %v402_v49 = vld [vmem:[%s3029_s10 + $0x230] sm:$0xff]  ;;  %v632_v53 = vadd.f32 %v3063_v44, %v519_v29 }
  0xd4   : > { %1606 = vmatprep.mubr.bf16.mxu1 %v2840_v0  ;;  %v702_v18 = vmax.f32 %v606_v63, 0.0  ;;  %v508_v63 = vmul.f32 %v3111_v32, %v395_v40  ;;  %v511_v27 = vmul.f32 %v3111_v32, %v398_v9  ;;  %v811_v29 = vadd.s32 %v3052_v38, %v777_v8  ;;  %v424_v8 = vld [vmem:[%s3029_s10 + $0x2e0] sm:$0xff] }
  0xd5   : > { %v635_v54 = vadd.f32 %v3063_v44, %v522_v30  ;;  %v728_v1 = vmax.f32 %v632_v53, 0.0  ;;  %v418_v30 = vld [vmem:[%s3029_s10 + $0x2b0] sm:$0xff] }
  0xd6   : > { %v2318_v35 = vpack.c.bf16 %v705_v19, %v702_v18  ;;  %v621_v11 = vadd.f32 %v3130_v55, %v508_v63  ;;  %v625_v18 = vadd.f32 %v3069_v46, %v512_v3  ;;  %v531_v40 = vmul.f32 %v3060_v43, %v418_v30  ;;  %v411_v63 = vld [vmem:[%s3029_s10 + $0x278] sm:$0xff] }
  0xd7   : > { %v624_v51 = vadd.f32 %v3130_v55, %v511_v27  ;;  %v782_v27 = vadd.s32 248, %v3045_v26 }
  0xd8   : > { %2307 = vmatmul.mubr.msk.bf16.gmra.mxu0 %vm3285_vm4, %v2306_v20  ;;  %v499_v20 = vmul.f32 %v3111_v32, %v386_v5  ;;  %v731_v5 = vmax.f32 %v635_v54, 0.0  ;;  %vm841_vm4 = vcmp.lt.s32.totalorder %v809_v52, 1000  ;;  %v721_v33 = vmax.f32 %v625_v18, 0.0  ;;  %v404_v54 = vld [vmem:[%s3029_s10 + $0x240] sm:$0xff]  ;;  %v407_v52 = vld [vmem:[%s3029_s10 + $0x258] sm:$0xff] }
  0xd9   : > { %2310 = vmatprep.mubr.msk.bf16.mxu0 %vm3319_vm7, %v2309_v24  ;;  %v712_v24 = vmax.f32 %v616_v4, 0.0  ;;  %v515_v4 = vmul.f32 %v3066_v45, %v402_v49  ;;  %vm3492_vm6 = vmpackc.low %vm842_vm5, %vm841_vm4  ;;  %v627_v49 = vadd.f32 %v3130_v55, %v514_v23 }
  0xda   : > { %v612_v36 = vadd.f32 %v3130_v55, %v499_v20  ;;  %v2399_v20 = vpack.c.bf16 %v731_v5, %v728_v1  ;;  %v517_v5 = vmul.f32 %v3111_v32, %v404_v54 }
  0xdb   : > { %2394 = vmatmul.mubr.msk.bf16.gmra.mxu1 %vm3421_vm0, %v2393_v7  ;;  %v2321_v39 = vpack.c.bf16 %v712_v24, %v709_v17  ;;  %v528_v7 = vmul.f32 %v3060_v43, %v415_v59  ;;  %v628_v19 = vadd.f32 %v3069_v46, %v515_v4  ;;  %v408_v17 = vld [vmem:[%s3029_s10 + $0x260] sm:$0xff]  ;;  %v638_v24 = vadd.f32 %v3063_v44, %v525_v6 }
  0xdc   : > { %1616 = vmatprep.mubr.bf16.mxu1 %v2840_v0  ;;  %v708_v60 = vmax.f32 %v612_v36, 0.0  ;;  %v812_v36 = vadd.s32 %v3052_v38, %v778_v14  ;;  %v720_v4 = vmax.f32 %v624_v51, 0.0  ;;  %v723_v1 = vmax.f32 %v627_v49, 0.0 }
  0xdd   : > { %v641_v25 = vadd.f32 %v3063_v44, %v528_v7  ;;  %v734_v37 = vmax.f32 %v638_v24, 0.0  ;;  %v520_v6 = vmul.f32 %v3111_v32, %v407_v52  ;;  %v524_v14 = vmul.f32 %v3066_v45, %v411_v63  ;;  %v419_v63 = vld [vmem:[%s3029_s10 + $0x2b8] sm:$0xff] }
  0xde   : > { %v2324_v16 = vpack.c.bf16 %v711_v62, %v708_v60  ;;  %vm844_vm8 = vcmp.lt.s32.totalorder %v812_v36, 1000  ;;  %v631_v60 = vadd.f32 %v3069_v46, %v518_v42  ;;  %v2336_v22 = vpack.c.bf16 %v723_v1, %v720_v4  ;;  %v420_v36 = vld [vmem:[%s3029_s10 + $0x2c0] sm:$0xff] }
  0xdf   : > { %v633_v24 = vadd.f32 %v3130_v55, %v520_v6  ;;  %v816_v51 = vadd.s32 %v3052_v38, %v782_v27  ;;  %v533_v56 = vmul.f32 %v3066_v45, %v420_v36  ;;  %v532_v6 = vmul.f32 %v3111_v32, %v419_v63 }
  0xe0   : > { %2313 = vmatmul.mubr.msk.bf16.gmra.mxu0 %vm3319_vm7, %v2312_v41  ;;  %v505_v41 = vmul.f32 %v3111_v32, %v392_v48  ;;  %v737_v48 = vmax.f32 %v641_v25, 0.0  ;;  %vm843_vm7 = vcmp.lt.s32.totalorder %v811_v29, 1000  ;;  %v727_v9 = vmax.f32 %v631_v60, 0.0 }
  0xe1   : > { %2316 = vmatprep.mubr.msk.bf16.mxu0 %vm3353_vm10, %v2315_v2  ;;  %v718_v2 = vmax.f32 %v622_v47, 0.0  ;;  %v521_v47 = vmul.f32 %v3066_v45, %v408_v17  ;;  %vm3527_vm9 = vmpackc.low %vm844_vm8, %vm843_vm7  ;;  %v630_v17 = vadd.f32 %v3130_v55, %v517_v5  ;;  %v781_v25 = vadd.s32 240, %v3045_v26 }
  0xe2   : > { %v618_v10 = vadd.f32 %v3130_v55, %v505_v41  ;;  %v2402_v41 = vpack.c.bf16 %v737_v48, %v734_v37  ;;  %v637_v29 = vadd.f32 %v3069_v46, %v524_v14  ;;  %vm848_vm14 = vcmp.lt.s32.totalorder %v816_v51, 1000 }
  0xe3   : > { %2397 = vmatmul.mubr.msk.bf16.gmra.mxu1 %vm3455_vm3, %v2396_v50  ;;  %v2327_v15 = vpack.c.bf16 %v718_v2, %v715_v61  ;;  %v534_v50 = vmul.f32 %v3060_v43, %v421_v31  ;;  %v634_v62 = vadd.f32 %v3069_v46, %v521_v47  ;;  %v414_v61 = vld [vmem:[%s3029_s10 + $0x290] sm:$0xff]  ;;  %v644_v2 = vadd.f32 %v3063_v44, %v531_v40  ;;  %v413_v31 = vld [vmem:[%s3029_s10 + $0x288] sm:$0xff] }
  0xe4   : > { %1626 = vmatprep.mubr.bf16.mxu1 %v2840_v0  ;;  %v714_v34 = vmax.f32 %v618_v10, 0.0  ;;  %v813_v10 = vadd.s32 %v3052_v38, %v779_v57  ;;  %v726_v42 = vmax.f32 %v630_v17, 0.0  ;;  %v729_v47 = vmax.f32 %v633_v24, 0.0 }
  0xe5   : > { %v647_v3 = vadd.f32 %v3063_v44, %v534_v50  ;;  %v730_v13 = vmax.f32 %v634_v62, 0.0  ;;  %v740_v18 = vmax.f32 %v644_v2, 0.0  ;;  %v526_v40 = vmul.f32 %v3111_v32, %v413_v31  ;;  %v423_v2 = vld [vmem:[%s3029_s10 + $0x2d8] sm:$0xff] }
  0xe6   : > { %v815_v50 = vadd.s32 %v3052_v38, %v781_v25  ;;  %v2342_v57 = vpack.c.bf16 %v729_v47, %v726_v42  ;;  %v646_v62 = vadd.f32 %v3069_v46, %v533_v56 }
  0xe7   : > { %v743_v12 = vmax.f32 %v647_v3, 0.0  ;;  %v2339_v23 = vpack.c.bf16 %v730_v13, %v727_v9  ;;  %v426_v3 = vld [vmem:[%s3029_s10 + $0x2f0] sm:$0xff]  ;;  %v645_v13 = vadd.f32 %v3130_v55, %v532_v6 }
  0xe8   : > { %2319 = vmatmul.mubr.msk.bf16.gmra.mxu0 %vm3353_vm10, %v2318_v35  ;;  %v717_v35 = vmax.f32 %v621_v11, 0.0  ;;  %v814_v11 = vadd.s32 %v3052_v38, %v780_v58  ;;  %vm845_vm10 = vcmp.lt.s32.totalorder %v813_v10, 1000  ;;  %v639_v58 = vadd.f32 %v3130_v55, %v526_v40 }
  0xe9   : > { %2322 = vmatprep.mubr.msk.bf16.mxu0 %vm3387_vm13, %v2321_v39  ;;  %v724_v39 = vmax.f32 %v628_v19, 0.0  ;;  %v537_v19 = vmul.f32 %v3060_v43, %v424_v8  ;;  %v536_v10 = vmul.f32 %v3066_v45, %v423_v2 }
  0xea   : > { %v2330_v53 = vpack.c.bf16 %v717_v35, %v714_v34  ;;  %vm846_vm11 = vcmp.lt.s32.totalorder %v814_v11, 1000  ;;  %v2405_v34 = vpack.c.bf16 %v743_v12, %v740_v18  ;;  %v417_v35 = vld [vmem:[%s3029_s10 + $0x2a8] sm:$0xff]  ;;  %v735_v1 = vmax.f32 %v639_v58, 0.0  ;;  %v422_v12 = vld [vmem:[%s3029_s10 + $0x2d0] sm:$0xff] }
  0xeb   : > { %2400 = vmatmul.mubr.msk.bf16.gmra.mxu1 %vm3492_vm6, %v2399_v20  ;;  %v2333_v59 = vpack.c.bf16 %v724_v39, %v721_v33  ;;  %v650_v33 = vadd.f32 %v3063_v44, %v537_v19  ;;  %vm3560_vm12 = vmpackc.low %vm846_vm11, %vm845_vm10  ;;  %v539_v11 = vmul.f32 %v3066_v45, %v426_v3  ;;  %v425_v19 = vld [vmem:[%s3029_s10 + $0x2e8] sm:$0xff] }
  0xec   : > { %1636 = vmatprep.mubr.bf16.mxu1 %v2840_v0  ;;  %v538_v17 = vmul.f32 %v3111_v32, %v425_v19 }
  0xed   : > { %v746_v54 = vmax.f32 %v650_v33, 0.0  ;;  %v652_v18 = vadd.f32 %v3069_v46, %v539_v11 }
  0xef   : > { %v748_v25 = vmax.f32 %v652_v18, 0.0 }
  0xf0   : > { %2325 = vmatmul.mubr.msk.bf16.gmra.mxu0 %vm3387_vm13, %v2324_v16  ;;  %v427_v16 = vld [vmem:[%s3029_s10 + $0x2f8] sm:$0xff]  ;;  %vm847_vm13 = vcmp.lt.s32.totalorder %v815_v50, 1000 }
  0xf1   : > { %2328 = vmatprep.mubr.msk.bf16.mxu0 %vm3421_vm0, %v2327_v15  ;;  %v527_v15 = vmul.f32 %v3066_v45, %v414_v61  ;;  %v540_v20 = vmul.f32 %v3060_v43, %v427_v16  ;;  %v410_v43 = vld [vmem:[%s3029_s10 + $0x270] sm:$0xff]  ;;  %vm3585_vm15 = vmpackc.low %vm848_vm14, %vm847_vm13  ;;  %v742_v16 = vmax.f32 %v646_v62, 0.0 }
  0xf2   : > { %v523_v48 = vmul.f32 %v3111_v32, %v410_v43 }
  0xf3   : > { %2403 = vmatmul.mubr.msk.bf16.gmra.mxu1 %vm3527_vm9, %v2402_v41  ;;  %v640_v30 = vadd.f32 %v3069_v46, %v527_v15  ;;  %v653_v39 = vadd.f32 %v3063_v44, %v540_v20  ;;  %v733_v44 = vmax.f32 %v637_v29, 0.0  ;;  %v416_v41 = vld [vmem:[%s3029_s10 + $0x2a0] sm:$0xff]  ;;  %v649_v15 = vadd.f32 %v3069_v46, %v536_v10 }
  0xf4   : > { %1646 = vmatprep.mubr.bf16.mxu1 %v2840_v0  ;;  %v636_v38 = vadd.f32 %v3130_v55, %v523_v48  ;;  %v529_v5 = vmul.f32 %v3111_v32, %v416_v41 }
  0xf5   : > { %v736_v49 = vmax.f32 %v640_v30, 0.0  ;;  %v749_v52 = vmax.f32 %v653_v39, 0.0  ;;  %v745_v24 = vmax.f32 %v649_v15, 0.0 }
  0xf6   : > { %v642_v9 = vadd.f32 %v3130_v55, %v529_v5 }
  0xf7   : > { %v2408_v61 = vpack.c.bf16 %v749_v52, %v746_v54  ;;  %v2357_v29 = vpack.c.bf16 %v748_v25, %v745_v24 }
  0xf8   : > { %2331 = vmatmul.mubr.msk.bf16.gmra.mxu0 %vm3421_vm0, %v2330_v53  ;;  %v530_v53 = vmul.f32 %v3066_v45, %v417_v35  ;;  %v738_v20 = vmax.f32 %v642_v9, 0.0  ;;  %v741_v45 = vmax.f32 %v645_v13, 0.0 }
  0xf9   : > { %2334 = vmatprep.mubr.msk.bf16.mxu0 %vm3455_vm3, %v2333_v59  ;;  %v2345_v59 = vpack.c.bf16 %v736_v49, %v733_v44 }
  0xfa   : > { %v643_v60 = vadd.f32 %v3069_v46, %v530_v53  ;;  %v2354_v27 = vpack.c.bf16 %v741_v45, %v738_v20  ;;  %v651_v46 = vadd.f32 %v3130_v55, %v538_v17 }
  0xfb   : > { %2406 = vmatmul.mubr.msk.bf16.gmra.mxu1 %vm3560_vm12, %v2405_v34 }
  0xfc   : > { %1656 = vmatprep.mubr.bf16.mxu1 %v2840_v0  ;;  %v732_v0 = vmax.f32 %v636_v38, 0.0  ;;  %v739_v8 = vmax.f32 %v643_v60, 0.0  ;;  %v747_v30 = vmax.f32 %v651_v46, 0.0 }
  0xfe   : > { %v2348_v28 = vpack.c.bf16 %v735_v1, %v732_v0  ;;  %v2351_v14 = vpack.c.bf16 %v742_v16, %v739_v8 }
 0x100   : > { %2337 = vmatmul.mubr.msk.bf16.gmra.mxu0 %vm3455_vm3, %v2336_v22  ;;  %v535_v22 = vmul.f32 %v3111_v32, %v422_v12 }
 0x101   : > { %2340 = vmatprep.mubr.msk.bf16.mxu0 %vm3492_vm6, %v2339_v23 }
 0x102   : > { %v648_v23 = vadd.f32 %v3130_v55, %v535_v22 }
 0x103   : > { %2409 = vmatmul.mubr.msk.bf16.gmra.mxu1 %vm3585_vm15, %v2408_v61 }
 0x104   : > { %v744_v7 = vmax.f32 %v648_v23, 0.0 }
 0x106   : > { %v2360_v32 = vpack.c.bf16 %v747_v30, %v744_v7 }
 0x108   : > { %2343 = vmatmul.mubr.msk.bf16.gmra.mxu0 %vm3492_vm6, %v2342_v57 }
 0x109   : > { %2346 = vmatprep.mubr.msk.bf16.mxu0 %vm3527_vm9, %v2345_v59 }
 0x110   : > { %2349 = vmatmul.mubr.msk.bf16.gmra.mxu0 %vm3527_vm9, %v2348_v28 }
 0x111   : > { %2352 = vmatprep.mubr.msk.bf16.mxu0 %vm3560_vm12, %v2351_v14 }
 0x118   : > { %2355 = vmatmul.mubr.msk.bf16.gmra.mxu0 %vm3560_vm12, %v2354_v27 }
 0x119   : > { %2358 = vmatprep.mubr.msk.bf16.mxu0 %vm3585_vm15, %v2357_v29 }
 0x120   : > { %2361 = vmatmul.mubr.msk.bf16.gmra.mxu0 %vm3585_vm15, %v2360_v32 }
 0x14b   : > { %v1508_v43 = vpop.f32.mrf.mxu1 }
 0x14d   : > { %v1510_v31 = vpop.f32.mrf.mxu1 }
 0x14f   : > { %v1512_v34 = vpop.f32.mrf.mxu1 }
 0x151   : > { %v1514_v35 = vpop.f32.mrf.mxu1 }
 0x153   : > { %v1518_v36 = vpop.f32.mrf.mxu1 }
 0x155   : > { %v1520_v55 = vpop.f32.mrf.mxu1 }
 0x157   : > { %v1522_v33 = vpop.f32.mrf.mxu1 }
 0x159   : > { %v1524_v39 = vpop.f32.mrf.mxu1 }
 0x15b   : > { %v1528_v42 = vpop.f32.mrf.mxu1 }
 0x15d   : > { %v1530_v47 = vpop.f32.mrf.mxu1 }
 0x15f   : > { %v1532_v37 = vpop.f32.mrf.mxu1 }
 0x161   : > { %v1534_v40 = vpop.f32.mrf.mxu1 }
 0x163   : > { %v1538_v44 = vpop.f32.mrf.mxu1 }
 0x165   : > { %v1540_v56 = vpop.f32.mrf.mxu1 }
 0x167   : > { %v1542_v57 = vpop.f32.mrf.mxu1 }
 0x168   : > { %v1315_v48 = vpop.f32.mrf.mxu0 }
 0x169   : > { %v3620_v50 = vadd.f32 %v1508_v43, %v1315_v48  ;;  %v1544_v59 = vpop.f32.mrf.mxu1 }
 0x16a   : > { %v1317_v51 = vpop.f32.mrf.mxu0 }
 0x16b   : > { %1667 = vst [vmem:[%s3622_s30] sm:$0xff] %v3620_v50  ;;  %v3626_v49 = vadd.f32 %v1510_v31, %v1317_v51  ;;  %v1548_v41 = vpop.f32.mrf.mxu1 }
 0x16c   : > { %v1319_v53 = vpop.f32.mrf.mxu0 }
 0x16d   : > { %1668 = vst [vmem:[%s3622_s30 + $0x8] sm:$0xff] %v3626_v49  ;;  %v3630_v54 = vadd.f32 %v1512_v34, %v1319_v53  ;;  %v1550_v2 = vpop.f32.mrf.mxu1 }
 0x16e   : > { %v1321_v52 = vpop.f32.mrf.mxu0 }
 0x16f   : > { %1669 = vst [vmem:[%s3622_s30 + $0x10] sm:$0xff] %v3630_v54  ;;  %v3634_v38 = vadd.f32 %v1514_v35, %v1321_v52  ;;  %v1552_v0 = vpop.f32.mrf.mxu1 }
 0x170   : > { %v1325_v58 = vpop.f32.mrf.mxu0 }
 0x171   : > { %1670 = vst [vmem:[%s3622_s30 + $0x18] sm:$0xff] %v3634_v38  ;;  %v3638_v60 = vadd.f32 %v1518_v36, %v1325_v58  ;;  %v1554_v6 = vpop.f32.mrf.mxu1 }
 0x172   : > { %v1327_v62 = vpop.f32.mrf.mxu0 }
 0x173   : > { %1671 = vst [vmem:[%s3622_s30 + $0x20] sm:$0xff] %v3638_v60  ;;  %v3642_v63 = vadd.f32 %v1520_v55, %v1327_v62  ;;  %v1558_v10 = vpop.f32.mrf.mxu1 }
 0x174   : > { %v1329_v61 = vpop.f32.mrf.mxu0 }
 0x175   : > { %1672 = vst [vmem:[%s3622_s30 + $0x28] sm:$0xff] %v3642_v63  ;;  %v3646_v3 = vadd.f32 %v1522_v33, %v1329_v61  ;;  %v1560_v9 = vpop.f32.mrf.mxu1 }
 0x176   : > { %v1331_v4 = vpop.f32.mrf.mxu0 }
 0x177   : > { %1673 = vst [vmem:[%s3622_s30 + $0x30] sm:$0xff] %v3646_v3  ;;  %v3650_v1 = vadd.f32 %v1524_v39, %v1331_v4  ;;  %v1562_v15 = vpop.f32.mrf.mxu1 }
 0x178   : > { %v1335_v5 = vpop.f32.mrf.mxu0 }
 0x179   : > { %1674 = vst [vmem:[%s3622_s30 + $0x38] sm:$0xff] %v3650_v1  ;;  %v3654_v8 = vadd.f32 %v1528_v42, %v1335_v5  ;;  %v1564_v19 = vpop.f32.mrf.mxu1 }
 0x17a   : > { %v1337_v16 = vpop.f32.mrf.mxu0 }
 0x17b   : > { %1675 = vst [vmem:[%s3622_s30 + $0x40] sm:$0xff] %v3654_v8  ;;  %v3658_v11 = vadd.f32 %v1530_v47, %v1337_v16  ;;  %v1568_v22 = vpop.f32.mrf.mxu1 }
 0x17c   : > { %v1339_v28 = vpop.f32.mrf.mxu0 }
 0x17d   : > { %1676 = vst [vmem:[%s3622_s30 + $0x48] sm:$0xff] %v3658_v11  ;;  %v3662_v13 = vadd.f32 %v1532_v37, %v1339_v28  ;;  %v1570_v25 = vpop.f32.mrf.mxu1 }
 0x17e   : > { %v1341_v14 = vpop.f32.mrf.mxu0 }
 0x17f   : > { %1677 = vst [vmem:[%s3622_s30 + $0x50] sm:$0xff] %v3662_v13  ;;  %v3666_v18 = vadd.f32 %v1534_v40, %v1341_v14  ;;  %v1572_v46 = vpop.f32.mrf.mxu1 }
 0x180   : > { %v1345_v12 = vpop.f32.mrf.mxu0 }
 0x181   : > { %1678 = vst [vmem:[%s3622_s30 + $0x58] sm:$0xff] %v3666_v18  ;;  %v3670_v20 = vadd.f32 %v1538_v44, %v1345_v12  ;;  %v1574_v30 = vpop.f32.mrf.mxu1 }
 0x182   : > { %v1347_v45 = vpop.f32.mrf.mxu0 }
 0x183   : > { %1679 = vst [vmem:[%s3622_s30 + $0x60] sm:$0xff] %v3670_v20  ;;  %v3674_v17 = vadd.f32 %v1540_v56, %v1347_v45  ;;  %v1578_v31 = vpop.f32.mrf.mxu1 }
 0x184   : > { %v1349_v24 = vpop.f32.mrf.mxu0 }
 0x185   : > { %1680 = vst [vmem:[%s3622_s30 + $0x68] sm:$0xff] %v3674_v17  ;;  %v3678_v27 = vadd.f32 %v1542_v57, %v1349_v24  ;;  %v1580_v36 = vpop.f32.mrf.mxu1 }
 0x186   : > { %v1351_v23 = vpop.f32.mrf.mxu0 }
 0x187   : > { %1681 = vst [vmem:[%s3622_s30 + $0x70] sm:$0xff] %v3678_v27  ;;  %v3682_v29 = vadd.f32 %v1544_v59, %v1351_v23  ;;  %v1582_v39 = vpop.f32.mrf.mxu1 }
 0x188   : > { %v1355_v7 = vpop.f32.mrf.mxu0 }
 0x189   : > { %1682 = vst [vmem:[%s3622_s30 + $0x78] sm:$0xff] %v3682_v29  ;;  %v3686_v32 = vadd.f32 %v1548_v41, %v1355_v7  ;;  %v1584_v37 = vpop.f32.mrf.mxu1 }
 0x18a   : > { %v1357_v43 = vpop.f32.mrf.mxu0 }
 0x18b   : > { %1683 = vst [vmem:[%s3622_s30 + $0x80] sm:$0xff] %v3686_v32  ;;  %v3690_v34 = vadd.f32 %v1550_v2, %v1357_v43  ;;  %v1588_v51 = vpop.f32.mrf.mxu1  ;;  %v1830_v43 = vmul.f32 %v3630_v54, %v3630_v54 }
 0x18c   : > { %v1359_v35 = vpop.f32.mrf.mxu0 }
 0x18d   : > { %1684 = vst [vmem:[%s3622_s30 + $0x88] sm:$0xff] %v3690_v34  ;;  %v3694_v55 = vadd.f32 %v1552_v0, %v1359_v35  ;;  %v1590_v56 = vpop.f32.mrf.mxu1 }
 0x18e   : > { %v1361_v33 = vpop.f32.mrf.mxu0 }
 0x18f   : > { %1685 = vst [vmem:[%s3622_s30 + $0x90] sm:$0xff] %v3694_v55  ;;  %v3698_v42 = vadd.f32 %v1554_v6, %v1361_v33  ;;  %v1592_v58 = vpop.f32.mrf.mxu1  ;;  %v1828_v33 = vmul.f32 %v3620_v50, %v3620_v50 }
 0x190   : > { %v1365_v47 = vpop.f32.mrf.mxu0 }
 0x191   : > { %1686 = vst [vmem:[%s3622_s30 + $0x98] sm:$0xff] %v3698_v42  ;;  %v3702_v48 = vadd.f32 %v1558_v10, %v1365_v47  ;;  %v3716_v41 = vpop.f32.mrf.mxu1  ;;  %v1832_v47 = vmul.f32 %v3638_v60, %v3638_v60 }
 0x192   : > { %v1367_v40 = vpop.f32.mrf.mxu0 }
 0x193   : > { %1687 = vst [vmem:[%s3622_s30 + $0xa0] sm:$0xff] %v3702_v48  ;;  %v3706_v44 = vadd.f32 %v1560_v9, %v1367_v40  ;;  %v3722_v4 = vpop.f32.mrf.mxu1 }
 0x194   : > { %v1369_v53 = vpop.f32.mrf.mxu0 }
 0x195   : > { %1688 = vst [vmem:[%s3622_s30 + $0xa8] sm:$0xff] %v3706_v44  ;;  %v3710_v52 = vadd.f32 %v1562_v15, %v1369_v53  ;;  %v3728_v6 = vpop.f32.mrf.mxu1  ;;  %v1731_v53 = vadd.f32 %v3630_v54, %v3620_v50  ;;  %v1768_v50 = vadd.f32 %v3634_v38, %v3626_v49 }
 0x196   : > { %v1371_v57 = vpop.f32.mrf.mxu0 }
 0x197   : > { %1689 = vst [vmem:[%s3622_s30 + $0xb0] sm:$0xff] %v3710_v52  ;;  %v3714_v59 = vadd.f32 %v1564_v19, %v1371_v57  ;;  %v3734_v28 = vpop.f32.mrf.mxu1  ;;  %v1829_v57 = vmul.f32 %v3626_v49, %v3626_v49  ;;  %v1732_v54 = vadd.f32 %v1731_v53, %v3638_v60  ;;  %v1769_v49 = vadd.f32 %v1768_v50, %v3642_v63 }
 0x198   : > { %v1375_v62 = vpop.f32.mrf.mxu0 }
 0x199   : > { %1690 = vst [vmem:[%s3622_s30 + $0xb8] sm:$0xff] %v3714_v59  ;;  %v3720_v61 = vadd.f32 %v1568_v22, %v1375_v62  ;;  %v3740_v15 = vpop.f32.mrf.mxu1  ;;  %v1892_v62 = vadd.f32 %v1830_v43, %v1828_v33  ;;  %v1836_v43 = vmul.f32 %v3654_v8, %v3654_v8 }
 0x19a   : > { %v1377_v2 = vpop.f32.mrf.mxu0 }
 0x19b   : > { %1691 = vst [vmem:[%s3622_s30 + $0xc0] sm:$0xff] %v3720_v61  ;;  %v3726_v0 = vadd.f32 %v1570_v25, %v1377_v2  ;;  %v3746_v45 = vpop.f32.mrf.mxu1  ;;  %v1833_v2 = vmul.f32 %v3642_v63, %v3642_v63  ;;  %v1770_v63 = vadd.f32 %v1769_v49, %v3650_v1 }
 0x19c   : > { %v1379_v5 = vpop.f32.mrf.mxu0 }
 0x19d   : > { %1692 = vst [vmem:[%s3622_s30 + $0xc8] sm:$0xff] %v3726_v0  ;;  %v3732_v16 = vadd.f32 %v1572_v46, %v1379_v5  ;;  %v3752_v25 = vpop.f32.mrf.mxu1  ;;  %v1834_v5 = vmul.f32 %v3646_v3, %v3646_v3 }
 0x19e   : > { %v1381_v10 = vpop.f32.mrf.mxu0 }
 0x19f   : > { %1693 = vst [vmem:[%s3622_s30 + $0xd0] sm:$0xff] %v3732_v16  ;;  %v3738_v9 = vadd.f32 %v1574_v30, %v1381_v10  ;;  %v3758_v7 = vpop.f32.mrf.mxu1 }
 0x1a0   : > { %v1385_v14 = vpop.f32.mrf.mxu0 }
 0x1a1   : > { %1694 = vst [vmem:[%s3622_s30 + $0xd8] sm:$0xff] %v3738_v9  ;;  %v3744_v12 = vadd.f32 %v1578_v31, %v1385_v14  ;;  %v3766_v35 = vpop.f32.mrf.mxu1 }
 0x1a2   : > { %v1387_v19 = vpop.f32.mrf.mxu0 }
 0x1a3   : > { %1695 = vst [vmem:[%s3622_s30 + $0xe0] sm:$0xff] %v3744_v12  ;;  %v3750_v22 = vadd.f32 %v1580_v36, %v1387_v19  ;;  %v3778_v40 = vpop.f32.mrf.mxu1 }
 0x1a4   : > { %v1389_v24 = vpop.f32.mrf.mxu0 }
 0x1a5   : > { %1696 = vst [vmem:[%s3622_s30 + $0xe8] sm:$0xff] %v3750_v22  ;;  %v3756_v23 = vadd.f32 %v1582_v39, %v1389_v24  ;;  %v1831_v39 = vmul.f32 %v3634_v38, %v3634_v38  ;;  %v3792_v14 = vpop.f32.mrf.mxu1  ;;  %v1893_v24 = vadd.f32 %v1892_v62, %v1832_v47  ;;  %v1733_v38 = vadd.f32 %v1732_v54, %v3646_v3 }
 0x1a6   : > { %v1391_v46 = vpop.f32.mrf.mxu0  ;;  %v1837_v47 = vmul.f32 %v3658_v11, %v3658_v11 }
 0x1a7   : > { %1697 = vst [vmem:[%s3622_s30 + $0xf0] sm:$0xff] %v3756_v23  ;;  %v3762_v30 = vadd.f32 %v1584_v37, %v1391_v46  ;;  %v1929_v19 = vadd.f32 %v1831_v39, %v1829_v57  ;;  %v1835_v46 = vmul.f32 %v3650_v1, %v3650_v1  ;;  %v3805_v33 = vpop.f32.mrf.mxu1  ;;  %v1894_v39 = vadd.f32 %v1893_v24, %v1834_v5 }
 0x1a8   : > { %v1395_v31 = vpop.f32.mrf.mxu0  ;;  %v1734_v3 = vadd.f32 %v1733_v38, %v3654_v8  ;;  %v1839_v5 = vmul.f32 %v3666_v18, %v3666_v18  ;;  %v1771_v1 = vadd.f32 %v1770_v63, %v3658_v11 }
 0x1a9   : > { %1698 = vst [vmem:[%s3622_s30 + $0xf8] sm:$0xff] %v3762_v30  ;;  %v3770_v36 = vadd.f32 %v1588_v51, %v1395_v31  ;;  %v3818_v57 = vpop.f32.mrf.mxu1 }
 0x1aa   : > { %v1397_v37 = vpop.f32.mrf.mxu0  ;;  %v1735_v8 = vadd.f32 %v1734_v3, %v3662_v13  ;;  %v1772_v11 = vadd.f32 %v1771_v1, %v3666_v18 }
 0x1ab   : > { %1699 = vst [vmem:[%s3622_s30 + $0x100] sm:$0xff] %v3770_v36  ;;  %v3784_v51 = vadd.f32 %v1590_v56, %v1397_v37  ;;  %v1838_v37 = vmul.f32 %v3662_v13, %v3662_v13  ;;  %v3831_v54 = vpop.f32.mrf.mxu1 }
 0x1ac   : > { %v1399_v10 = vpop.f32.mrf.mxu0  ;;  %v1736_v13 = vadd.f32 %v1735_v8, %v3670_v20  ;;  %v1773_v18 = vadd.f32 %v1772_v11, %v3674_v17  ;;  %v1847_v8 = vmul.f32 %v3698_v42, %v3698_v42  ;;  %v1849_v11 = vmul.f32 %v3706_v44, %v3706_v44 }
 0x1ad   : > { %1700 = vst [vmem:[%s3622_s30 + $0x108] sm:$0xff] %v3784_v51  ;;  %v3799_v56 = vadd.f32 %v1592_v58, %v1399_v10  ;;  %v1930_v58 = vadd.f32 %v1929_v19, %v1833_v2  ;;  %v1895_v2 = vadd.f32 %v1894_v39, %v1836_v43  ;;  %v1840_v10 = vmul.f32 %v3670_v20, %v3670_v20  ;;  %v3844_v49 = vpop.f32.mrf.mxu1 }
 0x1ae   : > { %v1401_v31 = vpop.f32.mrf.mxu0  ;;  %v1842_v43 = vmul.f32 %v3678_v27, %v3678_v27  ;;  %v1843_v39 = vmul.f32 %v3682_v29, %v3682_v29  ;;  %v1737_v20 = vadd.f32 %v1736_v13, %v3678_v27  ;;  %v1850_v13 = vmul.f32 %v3710_v52, %v3710_v52 }
 0x1af   : > { %1701 = vst [vmem:[%s3622_s30 + $0x110] sm:$0xff] %v3799_v56  ;;  %v3812_v60 = vadd.f32 %v3716_v41, %v1401_v31  ;;  %v1931_v62 = vadd.f32 %v1930_v58, %v1835_v46  ;;  %v1896_v24 = vadd.f32 %v1895_v2, %v1838_v37  ;;  %v1841_v46 = vmul.f32 %v3674_v17, %v3674_v17 }
 0x1b0   : > { %v1405_v53 = vpop.f32.mrf.mxu0  ;;  %v1846_v2 = vmul.f32 %v3694_v55, %v3694_v55  ;;  %v1774_v17 = vadd.f32 %v1773_v18, %v3682_v29  ;;  %v1738_v27 = vadd.f32 %v1737_v20, %v3686_v32 }
 0x1b1   : > { %1702 = vst [vmem:[%s3622_s30 + $0x118] sm:$0xff] %v3812_v60  ;;  %v3825_v41 = vadd.f32 %v3722_v4, %v1405_v53  ;;  %v1932_v19 = vadd.f32 %v1931_v62, %v1837_v47  ;;  %v1897_v58 = vadd.f32 %v1896_v24, %v1840_v10  ;;  %v1844_v47 = vmul.f32 %v3686_v32, %v3686_v32  ;;  %v3857_v53 = vpop.f32.mrf.mxu1 }
 0x1b2   : > { %v1407_v50 = vpop.f32.mrf.mxu0  ;;  %v1845_v62 = vmul.f32 %v3690_v34, %v3690_v34  ;;  %v1775_v29 = vadd.f32 %v1774_v17, %v3690_v34  ;;  %v1739_v32 = vadd.f32 %v1738_v27, %v3694_v55 }
 0x1b3   : > { %1703 = vst [vmem:[%s3622_s30 + $0x120] sm:$0xff] %v3825_v41  ;;  %v3838_v4 = vadd.f32 %v3728_v6, %v1407_v50  ;;  %v1933_v38 = vadd.f32 %v1932_v19, %v1839_v5  ;;  %v1898_v3 = vadd.f32 %v1897_v58, %v1842_v43  ;;  %v3870_v10 = vpop.f32.mrf.mxu1  ;;  %v1848_v19 = vmul.f32 %v3702_v48, %v3702_v48 }
 0x1b4   : > { %v1409_v31 = vpop.f32.mrf.mxu0  ;;  %v1776_v58 = vadd.f32 %v1775_v29, %v3698_v42  ;;  %v1740_v34 = vadd.f32 %v1739_v32, %v3702_v48  ;;  %v1857_v32 = vmul.f32 %v3750_v22, %v3750_v22 }
 0x1b5   : > { %1704 = vst [vmem:[%s3622_s30 + $0x128] sm:$0xff] %v3838_v4  ;;  %v3851_v6 = vadd.f32 %v3734_v28, %v1409_v31  ;;  %v1934_v63 = vadd.f32 %v1933_v38, %v1841_v46  ;;  %v1899_v1 = vadd.f32 %v1898_v3, %v1844_v47  ;;  %v3883_v46 = vpop.f32.mrf.mxu1  ;;  %v1851_v47 = vmul.f32 %v3714_v59, %v3714_v59 }
 0x1b6   : > { %v1411_v37 = vpop.f32.mrf.mxu0  ;;  %v1777_v42 = vadd.f32 %v1776_v58, %v3706_v44  ;;  %v1741_v48 = vadd.f32 %v1740_v34, %v3710_v52  ;;  %v1860_v58 = vmul.f32 %v3770_v36, %v3770_v36 }
 0x1b7   : > { %1705 = vst [vmem:[%s3622_s30 + $0x130] sm:$0xff] %v3851_v6  ;;  %v3864_v28 = vadd.f32 %v3740_v15, %v1411_v37  ;;  %v1935_v50 = vadd.f32 %v1934_v63, %v1843_v39  ;;  %v1900_v31 = vadd.f32 %v1899_v1, %v1846_v2  ;;  %v1852_v37 = vmul.f32 %v3720_v61, %v3720_v61  ;;  %v3907_v20 = vpop.f32.mrf.mxu1 }
 0x1b8   : > { %v1415_v5 = vpop.f32.mrf.mxu0  ;;  %v1854_v2 = vmul.f32 %v3732_v16, %v3732_v16  ;;  %v1778_v17 = vadd.f32 %v1777_v42, %v3714_v59  ;;  %v1742_v44 = vadd.f32 %v1741_v48, %v3720_v61  ;;  %v1856_v1 = vmul.f32 %v3744_v12, %v3744_v12 }
 0x1b9   : > { %1706 = vst [vmem:[%s3622_s30 + $0x138] sm:$0xff] %v3864_v28  ;;  %v3877_v15 = vadd.f32 %v3746_v45, %v1415_v5  ;;  %v1936_v43 = vadd.f32 %v1935_v50, %v1845_v62  ;;  %v1901_v39 = vadd.f32 %v1900_v31, %v1848_v19  ;;  %v1853_v62 = vmul.f32 %v3726_v0, %v3726_v0  ;;  %v3931_v19 = vpop.f32.mrf.mxu1 }
 0x1ba   : > { %v1417_v24 = vpop.f32.mrf.mxu0  ;;  %v1855_v50 = vmul.f32 %v3738_v9, %v3738_v9  ;;  %v1779_v59 = vadd.f32 %v1778_v17, %v3726_v0  ;;  %v1743_v61 = vadd.f32 %v1742_v44, %v3732_v16 }
 0x1bb   : > { %1707 = vst [vmem:[%s3622_s30 + $0x140] sm:$0xff] %v3877_v15  ;;  %v3890_v45 = vadd.f32 %v3752_v25, %v1417_v24  ;;  %v1937_v25 = vadd.f32 %v1936_v43, %v1847_v8  ;;  %v1902_v3 = vadd.f32 %v1901_v39, %v1850_v13  ;;  %v1858_v43 = vmul.f32 %v3756_v23, %v3756_v23 }
 0x1bc   : > { %v1419_v38 = vpop.f32.mrf.mxu0  ;;  %v1744_v0 = vadd.f32 %v1743_v61, %v3744_v12  ;;  %v1868_v61 = vmul.f32 %v3877_v15, %v3877_v15 }
 0x1bd   : > { %1708 = vst [vmem:[%s3622_s30 + $0x148] sm:$0xff] %v3890_v45  ;;  %v3901_v55 = vadd.f32 %v3758_v7, %v1419_v38  ;;  %v1938_v63 = vadd.f32 %v1937_v25, %v1849_v11  ;;  %v1903_v27 = vadd.f32 %v1902_v3, %v1852_v37  ;;  %v1780_v11 = vadd.f32 %v1779_v59, %v3738_v9  ;;  %v3955_v25 = vpop.f32.mrf.mxu1 }
 0x1be   : > { %v1421_v18 = vpop.f32.mrf.mxu0  ;;  %v1859_v38 = vmul.f32 %v3762_v30, %v3762_v30  ;;  %v1745_v12 = vadd.f32 %v1744_v0, %v3756_v23  ;;  %v1861_v37 = vmul.f32 %v3784_v51, %v3784_v51  ;;  %v1863_v3 = vmul.f32 %v3812_v60, %v3812_v60 }
 0x1bf   : > { %1709 = vst [vmem:[%s3622_s30 + $0x150] sm:$0xff] %v3901_v55  ;;  %v3914_v7 = vadd.f32 %v3766_v35, %v1421_v18  ;;  %v1939_v35 = vadd.f32 %v1938_v63, %v1851_v47  ;;  %v1904_v29 = vadd.f32 %v1903_v27, %v1854_v2  ;;  %v1781_v9 = vadd.f32 %v1780_v11, %v3750_v22 }
 0x1c0   : > { %v1425_v5 = vpop.f32.mrf.mxu0  ;;  %v1862_v18 = vmul.f32 %v3799_v56, %v3799_v56  ;;  %v1746_v22 = vadd.f32 %v1745_v12, %v3770_v36  ;;  %v1866_v27 = vmul.f32 %v3851_v6, %v3851_v6  ;;  %v1867_v59 = vmul.f32 %v3864_v28, %v3864_v28 }
 0x1c1   : > { %1710 = vst [vmem:[%s3622_s30 + $0x158] sm:$0xff] %v3914_v7  ;;  %v3925_v52 = vadd.f32 %v3778_v40, %v1425_v5  ;;  %v1940_v24 = vadd.f32 %v1939_v35, %v1853_v62  ;;  %v1905_v13 = vadd.f32 %v1904_v29, %v1856_v1  ;;  %v1782_v48 = vadd.f32 %v1781_v9, %v3762_v30  ;;  %v3979_v5 = vpop.f32.mrf.mxu1 }
 0x1c2   : > { %v1427_v8 = vpop.f32.mrf.mxu0  ;;  %v1864_v62 = vmul.f32 %v3825_v41, %v3825_v41  ;;  %v1747_v36 = vadd.f32 %v1746_v22, %v3799_v56  ;;  %v1865_v35 = vmul.f32 %v3838_v4, %v3838_v4  ;;  %v1870_v11 = vmul.f32 %v3901_v55, %v3901_v55 }
 0x1c3   : > { %1711 = vst [vmem:[%s3622_s30 + $0x160] sm:$0xff] %v3925_v52  ;;  %v3938_v40 = vadd.f32 %v3792_v14, %v1427_v8  ;;  %v1941_v14 = vadd.f32 %v1940_v24, %v1855_v50  ;;  %v1906_v47 = vadd.f32 %v1905_v13, %v1858_v43  ;;  %v1783_v30 = vadd.f32 %v1782_v48, %v3784_v51  ;;  %v1650_v29 = vpop.f32.mrf.mxu1 }
 0x1c4   : > { %v1429_v31 = vpop.f32.mrf.mxu0  ;;  %v1748_v51 = vadd.f32 %v1747_v36, %v3825_v41 }
 0x1c5   : > { %1712 = vst [vmem:[%s3622_s30 + $0x168] sm:$0xff] %v3938_v40  ;;  %v3949_v16 = vadd.f32 %v3805_v33, %v1429_v31  ;;  %v1942_v39 = vadd.f32 %v1941_v14, %v1857_v32  ;;  %v1907_v63 = vadd.f32 %v1906_v47, %v1860_v58  ;;  %v1784_v1 = vadd.f32 %v1783_v30, %v3812_v60  ;;  %v1652_v9 = vpop.f32.mrf.mxu1 }
 0x1c6   : > { %v1431_v34 = vpop.f32.mrf.mxu0  ;;  %v1749_v41 = vadd.f32 %v1748_v51, %v3851_v6  ;;  %v1869_v31 = vmul.f32 %v3890_v45, %v3890_v45  ;;  %v1872_v58 = vmul.f32 %v3925_v52, %v3925_v52  ;;  %v1873_v47 = vmul.f32 %v3938_v40, %v3938_v40 }
 0x1c7   : > { %1713 = vst [vmem:[%s3622_s30 + $0x170] sm:$0xff] %v3949_v16  ;;  %v3962_v33 = vadd.f32 %v3818_v57, %v1431_v34  ;;  %v1943_v57 = vadd.f32 %v1942_v39, %v1859_v38  ;;  %v1908_v44 = vadd.f32 %v1907_v63, %v1862_v18  ;;  %v1785_v60 = vadd.f32 %v1784_v1, %v3838_v4 }
 0x1c8   : > { %v1435_v42 = vpop.f32.mrf.mxu0  ;;  %v1750_v4 = vadd.f32 %v1749_v41, %v3877_v15  ;;  %v1871_v38 = vmul.f32 %v3914_v7, %v3914_v7 }
 0x1c9   : > { %1714 = vst [vmem:[%s3622_s30 + $0x178] sm:$0xff] %v3962_v33  ;;  %v3973_v23 = vadd.f32 %v3831_v54, %v1435_v42  ;;  %v1944_v17 = vadd.f32 %v1943_v57, %v1861_v37  ;;  %v1909_v8 = vadd.f32 %v1908_v44, %v1864_v62  ;;  %v1786_v14 = vadd.f32 %v1785_v60, %v3864_v28 }
 0x1ca   : > { %v1437_v2 = vpop.f32.mrf.mxu0  ;;  %v1751_v28 = vadd.f32 %v1750_v4, %v3901_v55  ;;  %v1874_v37 = vmul.f32 %v3949_v16, %v3949_v16 }
 0x1cb   : > { %1715 = vst [vmem:[%s3622_s30 + $0x180] sm:$0xff] %v3973_v23  ;;  %v3986_v54 = vadd.f32 %v3844_v49, %v1437_v2  ;;  %v1945_v49 = vadd.f32 %v1944_v17, %v1863_v3  ;;  %v1910_v43 = vadd.f32 %v1909_v8, %v1866_v27  ;;  %v1787_v12 = vadd.f32 %v1786_v14, %v3890_v45  ;;  %v1654_v3 = vpop.f32.mrf.mxu1 }
 0x1cc   : > { %v1439_v50 = vpop.f32.mrf.mxu0  ;;  %v1752_v48 = vadd.f32 %v1751_v28, %v3925_v52  ;;  %v1876_v57 = vmul.f32 %v3973_v23, %v3973_v23 }
 0x1cd   : > { %1716 = vst [vmem:[%s3622_s30 + $0x188] sm:$0xff] %v3986_v54  ;;  %v3997_v56 = vadd.f32 %v3857_v53, %v1439_v50  ;;  %v1946_v32 = vadd.f32 %v1945_v49, %v1865_v35  ;;  %v1911_v13 = vadd.f32 %v1910_v43, %v1868_v61  ;;  %v1788_v42 = vadd.f32 %v1787_v12, %v3914_v7  ;;  %v1658_v51 = vpop.f32.mrf.mxu1 }
 0x1ce   : > { %v1441_v24 = vpop.f32.mrf.mxu0  ;;  %v1753_v7 = vadd.f32 %v1752_v48, %v3949_v16  ;;  %v1877_v30 = vmul.f32 %v3986_v54, %v3986_v54 }
 0x1cf   : > { %1717 = vst [vmem:[%s3622_s30 + $0x190] sm:$0xff] %v3997_v56  ;;  %v4008_v53 = vadd.f32 %v3870_v10, %v1441_v24  ;;  %v1947_v10 = vadd.f32 %v1946_v32, %v1867_v59  ;;  %v1789_v62 = vadd.f32 %v1788_v42, %v3938_v40  ;;  %v1878_v36 = vmul.f32 %v3997_v56, %v3997_v56 }
 0x1d0   : > { %v1445_v0 = vpop.f32.mrf.mxu0  ;;  %v1754_v35 = vadd.f32 %v1753_v7, %v3973_v23 }
 0x1d1   : > { %1718 = vst [vmem:[%s3622_s30 + $0x198] sm:$0xff] %v4008_v53  ;;  %v1639_v6 = vadd.f32 %v3883_v46, %v1445_v0  ;;  %v1948_v39 = vadd.f32 %v1947_v10, %v1869_v31  ;;  %v1912_v46 = vadd.f32 %v1911_v13, %v1870_v11  ;;  %v1790_v44 = vadd.f32 %v1789_v62, %v3962_v33  ;;  %v1660_v0 = vpop.f32.mrf.mxu1 }
 0x1d2   : > { %v1447_v34 = vpop.f32.mrf.mxu0  ;;  %v1755_v8 = vadd.f32 %v1754_v35, %v3997_v56 }
 0x1d3   : > { %1719 = vst [vmem:[%s3622_s30 + $0x1a0] sm:$0xff] %v1639_v6  ;;  %v1641_v15 = vadd.f32 %v3907_v20, %v1447_v34  ;;  %v1949_v55 = vadd.f32 %v1948_v39, %v1871_v38  ;;  %v1913_v22 = vadd.f32 %v1912_v46, %v1872_v58  ;;  %v1875_v20 = vmul.f32 %v3962_v33, %v3962_v33 }
 0x1d4   : > { %v1449_v18 = vpop.f32.mrf.mxu0  ;;  %v1880_v50 = vmul.f32 %v1639_v6, %v1639_v6  ;;  %v1791_v49 = vadd.f32 %v1790_v44, %v3986_v54  ;;  %v1756_v41 = vadd.f32 %v1755_v8, %v1639_v6 }
 0x1d5   : > { %1720 = vst [vmem:[%s3622_s30 + $0x1a8] sm:$0xff] %v1641_v15  ;;  %v1643_v45 = vadd.f32 %v3931_v19, %v1449_v18  ;;  %v1950_v2 = vadd.f32 %v1949_v55, %v1873_v47  ;;  %v1914_v19 = vadd.f32 %v1913_v22, %v1874_v37  ;;  %v1881_v61 = vmul.f32 %v1641_v15, %v1641_v15 }
 0x1d6   : > { %v1451_v63 = vpop.f32.mrf.mxu0  ;;  %v1792_v60 = vadd.f32 %v1791_v49, %v4008_v53 }
 0x1d7   : > { %1721 = vst [vmem:[%s3622_s30 + $0x1b0] sm:$0xff] %v1643_v45  ;;  %v1645_v52 = vadd.f32 %v3955_v25, %v1451_v63  ;;  %v1951_v16 = vadd.f32 %v1950_v2, %v1875_v20  ;;  %v1915_v27 = vadd.f32 %v1914_v19, %v1876_v57  ;;  %v1879_v25 = vmul.f32 %v4008_v53, %v4008_v53 }
 0x1d8   : > { %v1455_v17 = vpop.f32.mrf.mxu0  ;;  %v1793_v14 = vadd.f32 %v1792_v60, %v1641_v15  ;;  %v1662_v15 = vpop.f32.mrf.mxu1 }
 0x1d9   : > { %1722 = vst [vmem:[%s3622_s30 + $0x1b8] sm:$0xff] %v1645_v52  ;;  %v1649_v40 = vadd.f32 %v3979_v5, %v1455_v17  ;;  %v1952_v59 = vadd.f32 %v1951_v16, %v1877_v30  ;;  %v1916_v23 = vadd.f32 %v1915_v27, %v1878_v36  ;;  %v1882_v5 = vmul.f32 %v1643_v45, %v1643_v45 }
 0x1da   : > { %v1457_v1 = vpop.f32.mrf.mxu0  ;;  %v1883_v11 = vmul.f32 %v1645_v52, %v1645_v52  ;;  %v1794_v6 = vadd.f32 %v1793_v14, %v1645_v52  ;;  %v1664_v7 = vpop.f32.mrf.mxu1 }
 0x1db   : > { %1723 = vst [vmem:[%s3622_s30 + $0x1c0] sm:$0xff] %v1649_v40  ;;  %v1651_v33 = vadd.f32 %v1650_v29, %v1457_v1  ;;  %v1953_v43 = vadd.f32 %v1952_v59, %v1879_v25  ;;  %v1917_v31 = vadd.f32 %v1916_v23, %v1880_v50  ;;  %v1884_v54 = vmul.f32 %v1649_v40, %v1649_v40 }
 0x1dc   : > { %v1459_v24 = vpop.f32.mrf.mxu0  ;;  %v1757_v29 = vadd.f32 %v1756_v41, %v1643_v45 }
 0x1dd   : > { %1724 = vst [vmem:[%s3622_s30 + $0x1c8] sm:$0xff] %v1651_v33  ;;  %v1653_v32 = vadd.f32 %v1652_v9, %v1459_v24  ;;  %v1954_v10 = vadd.f32 %v1953_v43, %v1881_v61  ;;  %v1918_v13 = vadd.f32 %v1917_v31, %v1882_v5  ;;  %v1885_v38 = vmul.f32 %v1651_v33, %v1651_v33 }
 0x1de   : > { %v1461_v56 = vpop.f32.mrf.mxu0  ;;  %v1758_v34 = vadd.f32 %v1757_v29, %v1649_v40  ;;  %v1795_v47 = vadd.f32 %v1794_v6, %v1651_v33 }
 0x1df   : > { %1725 = vst [vmem:[%s3622_s30 + $0x1d0] sm:$0xff] %v1653_v32  ;;  %v1655_v4 = vadd.f32 %v1654_v3, %v1461_v56  ;;  %v1886_v58 = vmul.f32 %v1653_v32, %v1653_v32  ;;  %v1955_v12 = vadd.f32 %v1954_v10, %v1883_v11  ;;  %v1919_v28 = vadd.f32 %v1918_v13, %v1884_v54 }
 0x1e0   : > { %v1465_v53 = vpop.f32.mrf.mxu0  ;;  %v1759_v37 = vadd.f32 %v1758_v34, %v1653_v32 }
 0x1e1   : > { %1726 = vst [vmem:[%s3622_s30 + $0x1d8] sm:$0xff] %v1655_v4  ;;  %v1659_v9 = vadd.f32 %v1658_v51, %v1465_v53  ;;  %v1887_v39 = vmul.f32 %v1655_v4, %v1655_v4  ;;  %v1956_v48 = vadd.f32 %v1955_v12, %v1885_v38  ;;  %v1920_v45 = vadd.f32 %v1919_v28, %v1886_v58 }
 0x1e2   : > { %v1467_v46 = vpop.f32.mrf.mxu0  ;;  %v1796_v22 = vadd.f32 %v1795_v47, %v1655_v4 }
 0x1e3   : > { %1727 = vst [vmem:[%s3622_s30 + $0x1e0] sm:$0xff] %v1659_v9  ;;  %v1888_v18 = vmul.f32 %v1659_v9, %v1659_v9  ;;  %v1661_v42 = vadd.f32 %v1660_v0, %v1467_v46  ;;  %v1760_v20 = vadd.f32 %v1759_v37, %v1659_v9  ;;  %v1957_v3 = vadd.f32 %v1956_v48, %v1887_v39 }
 0x1e4   : > { %v1469_v55 = vpop.f32.mrf.mxu0 }
 0x1e5   : > { %1728 = vst [vmem:[%s3622_s30 + $0x1e8] sm:$0xff] %v1661_v42  ;;  %v1889_v57 = vmul.f32 %v1661_v42, %v1661_v42  ;;  %v1663_v63 = vadd.f32 %v1662_v15, %v1469_v55  ;;  %v1921_v62 = vadd.f32 %v1920_v45, %v1888_v18  ;;  %v1797_v2 = vadd.f32 %v1796_v22, %v1661_v42 }
 0x1e6   : > { %v1471_v52 = vpop.f32.mrf.mxu0 }
 0x1e7   : > { %1729 = vst [vmem:[%s3622_s30 + $0x1f0] sm:$0xff] %v1663_v63  ;;  %v1761_v19 = vadd.f32 %v1760_v20, %v1663_v63  ;;  %v1890_v30 = vmul.f32 %v1663_v63, %v1663_v63  ;;  %v1665_v36 = vadd.f32 %v1664_v7, %v1471_v52  ;;  %v1958_v17 = vadd.f32 %v1957_v3, %v1889_v57 }
 0x1e9   : > { %v1762_v44 = vrot.slane %v1761_v19, 4  ;;  %v1922_v35 = vadd.f32 %v1921_v62, %v1890_v30  ;;  %1730 = vst [vmem:[%s3622_s30 + $0x1f8] sm:$0xff] %v1665_v36  ;;  %v1798_v40 = vadd.f32 %v1797_v2, %v1665_v36  ;;  %v1891_v16 = vmul.f32 %v1665_v36, %v1665_v36 }
 0x1ea   : > { %2715 = shalt.err (!%p2712_p4)
}
 0x1eb   : > { %s2716_s10 = scalar_lea.hbm %s4067_s8, 8192  ;;  %s2720_s30 = scalar_lea.hbm %s4194_s4, 32768 }
 0x1ec   : > { %p2717_p6 = scmp.ne.s32.totalorder %s4067_s8, %s2716_s10  ;;  %p2721_p10 = scmp.lt.s32.totalorder %s4067_s8, %s4194_s4 }
 0x1ed   : > { %p2722_p5 = scmp.lt.s32.totalorder %s2720_s30, %s2716_s10 }
 0x1ee   : > { %p2718_p8 = pnand %p2717_p6, %p4247_p9 }
 0x1ef   : > { %p2723_p7 = por %p2722_p5, %p2721_p10 }
 0x1f0   : > { %p2719_p1 = pneg %p2718_p8 }
 0x1f2   : > { %p2724_p11 = pnand %p2723_p7, %p2719_p1 }
 0x1f4   : > { %2727 = shalt.err (!%p2724_p11)
}
 0x1f5   : > { %s2842_s12 = smov 256   ;;  %s2843_s26 = smov 16   ;;  %v1763_v27 = vadd.f32 %v1762_v44, %v1761_v19  ;;  %v1923_v25 = vrot.slane %v1922_v35, 4  ;;  %v1799_v50 = vrot.slane %v1798_v40, 4  ;;  %v1959_v1 = vadd.f32 %v1958_v17, %v1891_v16 }
 0x1f6   : > { %2443 = dma.vmem_to_hbm [thread:$0]  (%p4247_p9), %s4069_s9, 8192, %s4067_s8, %s1986_s15, %s2842_s12, %s2842_s12, %s2843_s26   ;;  %v2844_v51 = vmov 1966171168   ;;  %vm4101_vm0 = vcmp.lt.s32.totalorder %v430_v21, 256 }
 0x1f7   : > { %v1809_v49 = vunpack.c.l.s4 %v2844_v51  ;;  %v1764_v8 = vrot.slane %v1763_v27, 2  ;;  %v1924_v33 = vadd.f32 %v1923_v25, %v1922_v35  ;;  %v1800_v59 = vadd.f32 %v1799_v50, %v1798_v40  ;;  %s2215_s9 = sshll.u32 %s3025_s18, 1  ;;  %s1990_s8 = sand.u32 1, %s2903_s25  }
 0x1f8   : > { %v1960_v23 = vrot.slane %v1959_v1, 4  ;;  %s2424_s15 = sshll.u32 %s2903_s25, 5  ;;  %s321_s14 = scalar_lea.vmem [#allocation11], %s2215_s9 }
 0x1f9   : > { %v1765_v61 = vadd.f32 %v1764_v8, %v1763_v27  ;;  %v1925_v5 = vrot.slane %v1924_v33, 2  ;;  %v1801_v24 = vrot.slane %v1800_v59, 2  ;;  %v1810_v41 = vunpack.c.0.s8 %v1809_v49  ;;  %s2027_s19 = sshll.u32 %s321_s14, 4  ;;  %s4105_s18 = scalar_lea.vmem [#allocation13], %s2215_s9  ;;  %s4113_s19 = int_to_ptr.vmem [resolvable:$true] %s2027_s19 }
 0x1fa   : > { %v1961_v60 = vadd.f32 %v1960_v23, %v1959_v1  ;;  %s2041_s20 = sshll.u32 %s4105_s18, 4  ;;  %s4111_s25 = scalar_lea.hbm %s4195_s5, %s2424_s15  ;;  %s4122_s20 = int_to_ptr.vmem [resolvable:$true] %s2041_s20 }
 0x1fb   : > { %v1766_v32 = vrot.slane %v1765_v61, 1  ;;  %v1926_v43 = vadd.f32 %v1925_v5, %v1924_v33  ;;  %v1802_v31 = vadd.f32 %v1801_v24, %v1800_v59  ;;  %v1813_v4 = vsub.s32 %v1810_v41, %v3045_v26  ;;  %s4120_s7 = scalar_lea.hbm %s4196_s6, %s2424_s15  ;;  %s4124_s11 = scalar_lea.sflag [#allocation12], %s1990_s8 }
 0x1fc   : > { %v1962_v11 = vrot.slane %v1961_v60, 2  ;;  %s2728_s12 = scalar_lea.vmem %s4113_s19, 32  ;;  %s2845_s26 = smov [#allocation11]  }
 0x1fd   : > { %v1927_v54 = vrot.slane %v1926_v43, 1  ;;  %v1803_v0 = vrot.slane %v1802_v31, 1  ;;  %v1767_v14 = vadd.f32 %v1766_v32, %v1765_v61  ;;  %p2729_p12 = scmp.ne.s32.totalorder %s4113_s19, %s2728_s12  ;;  %s2732_s9 = sshll.u32 %s2845_s26, 4  ;;  %s2733_s9 = int_to_ptr.vmem [resolvable:$false] %s2732_s9 }
 0x1fe   : > { %v1963_v56 = vadd.f32 %v1962_v11, %v1961_v60  ;;  %s2734_s10 = scalar_lea.vmem %s2733_s9, 64  ;;  %p2735_p0 = scmp.lt.s32.totalorder %s4113_s19, %s2733_s9 }
 0x1ff   : > { %v1804_v29 = vadd.f32 %v1803_v0, %v1802_v31  ;;  %v1928_v13 = vadd.f32 %v1927_v54, %v1926_v43  ;;  %p2730_p13 = pnand %p2729_p12, %p4247_p9  ;;  %p2736_p2 = scmp.lt.s32.totalorder %s2734_s10, %s2728_s12 }
 0x200   : > { %v1964_v10 = vrot.slane %v1963_v56, 1 }
 0x201   : > { %v1807_v38 = vcombine.low %v1767_v14, %v1804_v29  ;;  %p2731_p3 = pneg %p2730_p13  ;;  %p2737_p4 = por %p2736_p2, %p2735_p0 }
 0x202   : > { %v1965_v58 = vadd.f32 %v1964_v10, %v1963_v56 }
 0x203   : > { %v1814_v53 = vrot.slane %v1807_v38, %v1813_v4  ;;  %p2738_p6 = pnand %p2737_p4, %p2731_p3 }
 0x204   : > { %v1968_v6 = vcombine.low %v1928_v13, %v1965_v58 }
 0x205   : > { %v1821_v9 = vrot.slane %v1814_v53, %v1813_v4 }
 0x206   : > { %v1975_v26 = vrot.slane %v1968_v6, %v1813_v4 }
 0x207   : > { %1827 = vst.msk [vmem:[%s321_s14] sm:$0x3] %vm4101_vm0, %v1821_v9 }
 0x208   : > { %v1982_v21 = vrot.slane %v1975_v26, %v1813_v4 }
 0x209   : > { %2741 = shalt.err (!%p2738_p6)
}
 0x20a   : > { %s2742_s8 = scalar_lea.hbm %s4111_s25, 32  ;;  %s2746_s27 = scalar_lea.hbm %s4195_s5, 128 }
 0x20b   : > { %p2743_p8 = scmp.ne.s32.totalorder %s4111_s25, %s2742_s8  ;;  %p2747_p5 = scmp.lt.s32.totalorder %s4111_s25, %s4195_s5 }
 0x20c   : > { %p2748_p7 = scmp.lt.s32.totalorder %s2746_s27, %s2742_s8 }
 0x20d   : > { %p2744_p1 = pnand %p2743_p8, %p4247_p9 }
 0x20e   : > { %p2749_p11 = por %p2748_p7, %p2747_p5 }
 0x20f   : > { %p2745_p10 = pneg %p2744_p1 }
 0x211   : > { %p2750_p12 = pnand %p2749_p11, %p2745_p10 }
 0x213   : > { %2753 = shalt.err (!%p2750_p12)
}
 0x214   : > { %2444 = dma.vmem_to_hbm [thread:$0]  (%p4247_p9), %s4113_s19, 32, %s4111_s25, %s4124_s11   ;;  %1984 = vst.msk [vmem:[%s4105_s18] sm:$0x3] %vm4101_vm0, %v1982_v21 }
 0x215   : > { %s2754_s12 = scalar_lea.vmem %s4122_s20, 32  ;;  %s2846_s26 = smov [#allocation13]  }
 0x216   : > { %p2755_p13 = scmp.ne.s32.totalorder %s4122_s20, %s2754_s12  ;;  %s2758_s9 = sshll.u32 %s2846_s26, 4  ;;  %s2759_s9 = int_to_ptr.vmem [resolvable:$false] %s2758_s9 }
 0x217   : > { %s2760_s10 = scalar_lea.vmem %s2759_s9, 64  ;;  %p2761_p2 = scmp.lt.s32.totalorder %s4122_s20, %s2759_s9 }
 0x218   : > { %p2756_p3 = pnand %p2755_p13, %p4247_p9  ;;  %p2762_p4 = scmp.lt.s32.totalorder %s2760_s10, %s2754_s12 }
 0x21a   : > { %p2757_p0 = pneg %p2756_p3  ;;  %p2763_p6 = por %p2762_p4, %p2761_p2 }
 0x21c   : > { %p2764_p8 = pnand %p2763_p6, %p2757_p0 }
 0x21e   : > { %2767 = shalt.err (!%p2764_p8)
}
 0x21f   : > { %s2768_s19 = scalar_lea.hbm %s4120_s7, 32  ;;  %s2772_s8 = scalar_lea.hbm %s4196_s6, 128 }
 0x220   : > { %p2769_p1 = scmp.ne.s32.totalorder %s4120_s7, %s2768_s19  ;;  %p2773_p7 = scmp.lt.s32.totalorder %s4120_s7, %s4196_s6 }
 0x221   : > { %p2774_p11 = scmp.lt.s32.totalorder %s2772_s8, %s2768_s19 }
 0x222   : > { %p2770_p10 = pnand %p2769_p1, %p4247_p9 }
 0x223   : > { %p2775_p12 = por %p2774_p11, %p2773_p7 }
 0x224   : > { %p2771_p5 = pneg %p2770_p10 }
 0x226   : > { %p2776_p13 = pnand %p2775_p12, %p2771_p5 }
 0x228   : > { %2779 = shalt.err (!%p2776_p13)
}
 0x229   : > { %2445 = dma.vmem_to_hbm [thread:$0]  (%p4247_p9), %s4122_s20, 32, %s4120_s7, %s4124_s11  }
 0x22a PF: > { %p2480_p3 = scmp.ge.s32.totalorder %s2830_s24, 2  ;;  %s2053_s27 = sand.u32 1, %s2818_s21  }
 0x22b   : > { %p4250_p0 = scmp.ne.s32.totalorder %s4203_s28, 0  ;;  %s2054_s29 = scalar_lea.sflag [#allocation4], %s2053_s27 }
 0x22d   : > { %p2464_p2 = pnand %p2480_p3, %p4250_p0 }
 0x22f   : > { %p2465_p4 = pneg %p2464_p2 }
 0x231   : > { %2809 = dma.done.wait (%p2465_p4), %s2054_s29, 8192  }
 0x232   : > { %2811 = vsyncadd (%p2465_p4), %s2054_s29, 4294959104  ;;  %s4251_s30 = sadd.s32 4294967294, %s2830_s24  }
 0x233   : > { %s2062_s12 = sand.u32 1, %s4251_s30  }
 0x234   : > { %s2063_s17 = scalar_lea.sflag [#allocation12], %s2062_s12 }
 0x235   : > { %2813 = dma.done.wait (%p2465_p4), %s2063_s17, 64  }
 0x236   : > { %2815 = vsyncadd (%p2465_p4), %s2063_s17, 4294967232  ;;  %p25_p9 = scmp.ge.s32.totalorder %s2970_s13, 6   ;;  %s4252_s21 = smov %s2822_s22 }
 0x237   : > { %s4253_s22 = smov %s2826_s23  ;;  %s4254_s23 = smov %s2980_s16 }
 0x238   : > { %s4255_s24 = smov %s2970_s13  ;;  %27 = sbr.rel (!%p25_p9) target bundleno = 9 (0x9), region = 125 }
 0x23d   :  { %2077 = vsyncpa [#allocation3], 1 }
 0x23e   :  { %2079 = vsyncpa [#allocation3 + $0x1], 1 }
 0x23f   :  { %2080 = vsyncpa [#allocation6], 1 }
 0x240   :  { %2081 = vsyncpa [#allocation9], 1 }
 0x241   :  { %2082 = vsyncpa [#allocation4], 1 }
 0x242   :  { %2084 = vsyncpa [#allocation4 + $0x1], 1 }
 0x243   :  { %2085 = vsyncpa [#allocation12], 1 }
 0x244   :  { %2087 = vsyncpa [#allocation12 + $0x1], 1 }

</bundles_post_ra>
